<compile_context>
chip_gen: v5e
topology: v5e:2x2
jax: 0.10.0
libtpu: 0.0.40
codegen_flags: <defaults>
</compile_context>

<pallas_src>
import functools

import jax
import jax.numpy as jnp
from jax import lax
from jax.experimental import pallas as pl
from jax.experimental.pallas import tpu as pltpu


def _resblock_kernel(x_ref, w1_ref, b1_ref, w2_ref, b2_ref, o_ref, patches_ref,
                     *, H, W, batch_block):
    # x_ref      : (batch_block, C, H*W)  flattened NCHW input block
    # w*_ref     : (C, 9*C)   conv weights, [c_out, (ky*3+kx)*C + c_in]
    # b*_ref     : (C, 1)     biases (f32)
    # o_ref      : (batch_block, C, H*W)  output block (lane-dense store)
    # patches_ref: (9*C, H*W) VMEM im2col scratch, reused by both convs and
    #              every batch item in this grid step.
    C = w1_ref.shape[0]
    HW = H * W
    compute_dtype = patches_ref.dtype

    # Validity masks, built ONCE per grid step at operand shape (C, HW).
    flat = lax.broadcasted_iota(jnp.int32, (C, HW), 1)
    col = flat % W
    top_ok = flat >= W                    # tap dy = -1 valid (h-1 >= 0)
    bot_ok = flat < (H - 1) * W           # tap dy = +1 valid (h+1 <= H-1)
    left_ok = col >= 1                    # tap dx = -1 valid (w-1 >= 0)
    right_ok = col <= W - 2               # tap dx = +1 valid (w+1 <= W-1)

    def tap_mask(dy, dx):
        m = None
        if dy == -1:
            m = top_ok
        elif dy == 1:
            m = bot_ok
        if dx == -1:
            m = left_ok if m is None else jnp.logical_and(m, left_ok)
        elif dx == 1:
            m = right_ok if m is None else jnp.logical_and(m, right_ok)
        return m

    masks = {(dy, dx): tap_mask(dy, dx) for dy in (-1, 0, 1) for dx in (-1, 0, 1)}
    zeros_cd = jnp.zeros((C, HW), compute_dtype)   # hoisted; shared by all wheres

    def conv3x3(img, w_ref, b_ref):
        # img: (C, HW) in compute_dtype.  Tap (dy, dx) of output pixel p needs
        # input pixel p + dy*W + dx; pltpu.roll (XLU) realizes the shift with
        # wraparound and the masks zero the wrapped rows / columns.
        t = 0
        for dy in (-1, 0, 1):
            for dx in (-1, 0, 1):
                s = dy * W + dx
                win = img if s == 0 else pltpu.roll(img, (-s) % HW, axis=1)
                m = masks[(dy, dx)]
                if m is not None:
                    win = jnp.where(m, win, zeros_cd)
                patches_ref[pl.ds(t * C, C), :] = win
                t += 1
        # One MXU matmul with contraction depth 9*C.
        # TODO(synk): for large C, accumulate 9 per-tap (C,C)x(C,HW) dots
        # instead of materializing the 9C x HW patches (v7x VMEM budget / MRB).
        acc = jnp.dot(w_ref[...], patches_ref[...],
                      preferred_element_type=jnp.float32)    # (C, HW) f32
        return acc + b_ref[...]                              # (C,1) broadcast

    for b in range(batch_block):          # static unroll; batch_block is small
        x2 = x_ref[b].astype(jnp.float32)                    # (C, HW) residual
        xin = x2 if compute_dtype == jnp.float32 else x2.astype(compute_dtype)
        y1 = jnp.maximum(conv3x3(xin, w1_ref, b1_ref), 0.0)  # conv1 + ReLU
        y1c = y1 if compute_dtype == jnp.float32 else y1.astype(compute_dtype)
        y2 = conv3x3(y1c, w2_ref, b2_ref)                    # conv2
        o_ref[b] = (y2 + x2).astype(o_ref.dtype)             # residual add


@functools.partial(jax.jit, static_argnames=("use_bf16", "batch_block"))
def resblock_forward(x_nchw, w1, b1, w2, b2, use_bf16=False, batch_block=None):
    """x_nchw: (B, C, H, W).  w*: (3, 3, Cin, Cout) HWIO, b*: (C,)."""
    B, C, H, W = x_nchw.shape
    HW = H * W

    if batch_block is None:
        # Keep >= 2 parallel grid steps so both v7x TensorCores get work; fold
        # the remaining batch into each step (fewer steps, better sublane
        # utilisation).  On single-TC v5e/v6e, batch_block=B is also fine.
        batch_block = max(1, B // 2) if B % 2 == 0 else 1
    assert B % batch_block == 0, "batch_block must divide the batch"

    # Free (metadata-only) reshape; no transposes, no host-side padding.
    x_flat = x_nchw.reshape(B, C, HW)

    # Pre-reshape weights to (C_out, 9*C_in) so each conv is one matmul.
    w1_r = jnp.transpose(w1, (3, 0, 1, 2)).reshape(C, 9 * C)
    w2_r = jnp.transpose(w2, (3, 0, 1, 2)).reshape(C, 9 * C)
    compute_dtype = jnp.float32
    if use_bf16:   # bf16 taps + MXU operands (best on v6e/v7x); f32 accum/tail
        compute_dtype = jnp.bfloat16
        w1_r = w1_r.astype(jnp.bfloat16)
        w2_r = w2_r.astype(jnp.bfloat16)
    b1_r = b1.reshape(C, 1).astype(jnp.float32)
    b2_r = b2.reshape(C, 1).astype(jnp.float32)

    kernel = functools.partial(_resblock_kernel, H=H, W=W,
                               batch_block=batch_block)

    out_flat = pl.pallas_call(
        kernel,
        out_shape=jax.ShapeDtypeStruct((B, C, HW), x_nchw.dtype),
        grid_spec=pltpu.PrefetchScalarGridSpec(
            num_scalar_prefetch=0,
            grid=(B // batch_block,),
            in_specs=[
                pl.BlockSpec((batch_block, C, HW), lambda i: (i, 0, 0)),
                # Constant index_maps keep weights/biases resident in VMEM
                # (not re-DMA'd per grid step).
                pl.BlockSpec((C, 9 * C), lambda i: (0, 0)),
                pl.BlockSpec((C, 1), lambda i: (0, 0)),
                pl.BlockSpec((C, 9 * C), lambda i: (0, 0)),
                pl.BlockSpec((C, 1), lambda i: (0, 0)),
            ],
            out_specs=pl.BlockSpec((batch_block, C, HW), lambda i: (i, 0, 0)),
            scratch_shapes=[pltpu.VMEM((9 * C, HW), compute_dtype)],
        ),
        compiler_params=pltpu.CompilerParams(
            dimension_semantics=("parallel",),
            # Ample for this shape; raise toward 64-100 MiB on v5e/v6e (and
            # budget <= 64 MiB on v7x) once C / H*W / batch_block grow.
            vmem_limit_bytes=32 * 1024 * 1024),
        cost_estimate=pl.CostEstimate(
            flops=4 * 9 * B * C * C * HW,
            transcendentals=0,
            bytes_accessed=2 * B * C * HW * 4 + 2 * (9 * C * C + C) * 4),
    )(x_flat, w1_r, b1_r, w2_r, b2_r)

    return out_flat.reshape(B, C, H, W)


def _reference_forward(x_nchw, w1, b1, w2, b2):
    """Pure-JAX reference using lax.conv_general_dilated (NCHW semantics)."""
    def conv(x, w, b):
        w_oihw = jnp.transpose(w, (3, 2, 0, 1))             # HWIO -> OIHW
        y = lax.conv_general_dilated(
            x, w_oihw, window_strides=(1, 1), padding=((1, 1), (1, 1)),
            dimension_numbers=('NCHW', 'OIHW', 'NCHW'))
        return y + b.reshape(1, -1, 1, 1)

    y = conv(x_nchw, w1, b1)
    y = jnp.maximum(y, 0.0)
    y = conv(y, w2, b2)
    return y + x_nchw


if __name__ == "__main__":
    # B=4 -> batch_block=2, grid=(2,): exercises the batched-per-step path and
    # keeps 2 parallel steps (one per v7x TensorCore).
    B, C, H, W = 4, 4, 16, 16
    key = jax.random.PRNGKey(0)
    kx, k1, kb1, k2, kb2 = jax.random.split(key, 5)

    x = jax.random.normal(kx, (B, C, H, W), dtype=jnp.float32)
    # Parameter init matching nn.Conv2d(C, C, 3, padding=1) shapes.
    fan_in = C * 3 * 3
    bound = 1.0 / (fan_in ** 0.5)
    w1 = jax.random.uniform(k1, (3, 3, C, C), jnp.float32, -bound, bound)
    b1 = jax.random.uniform(kb1, (C,), jnp.float32, -bound, bound)
    w2 = jax.random.uniform(k2, (3, 3, C, C), jnp.float32, -bound, bound)
    b2 = jax.random.uniform(kb2, (C,), jnp.float32, -bound, bound)

    out = resblock_forward(x, w1, b1, w2, b2)
    out = jax.block_until_ready(out)

    ref = _reference_forward(x, w1, b1, w2, b2)
    assert out.shape == (B, C, H, W)
    assert jnp.allclose(out, ref, atol=5e-4, rtol=5e-4), "mismatch vs reference"

    print("KERNEL_OK")
</pallas_src>

<mosaic_0001>
module attributes {stable_mosaic.version = 11 : i64} {
  func.func @_resblock_kernel(%arg0: i32, %arg1: memref<2x4x256xf32, #tpu.memory_space<vmem>>, %arg2: memref<4x36xf32, #tpu.memory_space<vmem>>, %arg3: memref<4x1xf32, #tpu.memory_space<vmem>>, %arg4: memref<4x36xf32, #tpu.memory_space<vmem>>, %arg5: memref<4x1xf32, #tpu.memory_space<vmem>>, %arg6: memref<2x4x256xf32, #tpu.memory_space<vmem>>, %arg7: memref<36x256xf32, #tpu.memory_space<vmem>>) attributes {dimension_semantics = [#tpu.dimension_semantics<parallel>], iteration_bounds = array<i64: 2>, scalar_prefetch = 0 : i64, scratch_operands = 1 : i64, tpu.core_type = #tpu.core_type<tc>, window_params = [{transform_indices = @transform_0, window_bounds = array<i64: 2, 4, 256>}, {pipeline_mode = #tpu.pipeline_mode<synchronous>, transform_indices = @transform_1, window_bounds = array<i64: 4, 36>}, {pipeline_mode = #tpu.pipeline_mode<synchronous>, transform_indices = @transform_2, window_bounds = array<i64: 4, 1>}, {pipeline_mode = #tpu.pipeline_mode<synchronous>, transform_indices = @transform_3, window_bounds = array<i64: 4, 36>}, {pipeline_mode = #tpu.pipeline_mode<synchronous>, transform_indices = @transform_4, window_bounds = array<i64: 4, 1>}, {transform_indices = @transform_5, window_bounds = array<i64: 2, 4, 256>}]} {
    %0 = tpu.iota {dimensions = array<i32: 1>} : vector<4x256xi32>
    %c16_i32 = arith.constant 16 : i32
    %c0_i32 = arith.constant 0 : i32
    %1 = arith.cmpi eq, %c16_i32, %c0_i32 : i32
    %c1_i32 = arith.constant 1 : i32
    %2 = arith.select %1, %c1_i32, %c16_i32 : i32
    %3 = vector.broadcast %2 : i32 to vector<4x256xi32>
    %4 = arith.remsi %0, %3 : vector<4x256xi32>
    %c0_i32_0 = arith.constant 0 : i32
    %5 = vector.broadcast %c0_i32_0 : i32 to vector<4x256xi32>
    %6 = arith.cmpi ne, %4, %5 : vector<4x256xi32>
    %c0_i32_1 = arith.constant 0 : i32
    %7 = vector.broadcast %c0_i32_1 : i32 to vector<4x256xi32>
    %8 = arith.cmpi slt, %4, %7 : vector<4x256xi32>
    %c0_i32_2 = arith.constant 0 : i32
    %9 = arith.cmpi slt, %2, %c0_i32_2 : i32
    %10 = vector.broadcast %9 : i1 to vector<4x256xi1>
    %11 = vector.broadcast %10 : vector<4x256xi1> to vector<4x256xi1>
    %12 = arith.xori %8, %11 : vector<4x256xi1>
    %13 = arith.andi %12, %6 : vector<4x256xi1>
    %14 = vector.broadcast %2 : i32 to vector<4x256xi32>
    %15 = arith.addi %4, %14 : vector<4x256xi32>
    %16 = arith.select %13, %15, %4 : vector<4x256xi1>, vector<4x256xi32>
    %c16_i32_3 = arith.constant 16 : i32
    %17 = vector.broadcast %c16_i32_3 : i32 to vector<4x256xi32>
    %18 = arith.cmpi sge, %0, %17 : vector<4x256xi32>
    %c240_i32 = arith.constant 240 : i32
    %19 = vector.broadcast %c240_i32 : i32 to vector<4x256xi32>
    %20 = arith.cmpi slt, %0, %19 : vector<4x256xi32>
    %c1_i32_4 = arith.constant 1 : i32
    %21 = vector.broadcast %c1_i32_4 : i32 to vector<4x256xi32>
    %22 = arith.cmpi sge, %16, %21 : vector<4x256xi32>
    %c14_i32 = arith.constant 14 : i32
    %23 = vector.broadcast %c14_i32 : i32 to vector<4x256xi32>
    %24 = arith.cmpi sle, %16, %23 : vector<4x256xi32>
    %25 = arith.andi %18, %22 : vector<4x256xi1>
    %26 = arith.andi %18, %24 : vector<4x256xi1>
    %27 = arith.andi %20, %22 : vector<4x256xi1>
    %28 = arith.andi %20, %24 : vector<4x256xi1>
    %cst = arith.constant 0.000000e+00 : f32
    %29 = vector.broadcast %cst : f32 to vector<4x256xf32>
    %c0 = arith.constant 0 : index
    %c0_5 = arith.constant 0 : index
    %c0_6 = arith.constant 0 : index
    %30 = vector.load %arg1[%c0, %c0_5, %c0_6] : memref<2x4x256xf32, #tpu.memory_space<vmem>>, vector<1x4x256xf32>
    %31 = vector.shape_cast %30 : vector<1x4x256xf32> to vector<4x256xf32>
    %c17_i32 = arith.constant 17 : i32
    %32 = tpu.dynamic_rotate %31 by %c17_i32 dim 1 : vector<4x256xf32>, i32 -> vector<4x256xf32>
    %33 = arith.select %25, %32, %29 : vector<4x256xi1>, vector<4x256xf32>
    %c0_7 = arith.constant 0 : index
    %c0_8 = arith.constant 0 : index
    %34 = vector.load %arg7[%c0_7, %c0_8] : memref<36x256xf32, #tpu.memory_space<vmem>>, vector<4x256xf32>
    tpu.vector_store %arg7[%c0_7, %c0_8], %33 {strides = array<i32>} : memref<36x256xf32, #tpu.memory_space<vmem>>, vector<4x256xf32>,
    %c16_i32_9 = arith.constant 16 : i32
    %35 = tpu.dynamic_rotate %31 by %c16_i32_9 dim 1 : vector<4x256xf32>, i32 -> vector<4x256xf32>
    %36 = arith.select %18, %35, %29 : vector<4x256xi1>, vector<4x256xf32>
    %c4 = arith.constant 4 : index
    %c0_10 = arith.constant 0 : index
    %37 = vector.load %arg7[%c4, %c0_10] : memref<36x256xf32, #tpu.memory_space<vmem>>, vector<4x256xf32>
    tpu.vector_store %arg7[%c4, %c0_10], %36 {strides = array<i32>} : memref<36x256xf32, #tpu.memory_space<vmem>>, vector<4x256xf32>,
    %c15_i32 = arith.constant 15 : i32
    %38 = tpu.dynamic_rotate %31 by %c15_i32 dim 1 : vector<4x256xf32>, i32 -> vector<4x256xf32>
    %39 = arith.select %26, %38, %29 : vector<4x256xi1>, vector<4x256xf32>
    %c8 = arith.constant 8 : index
    %c0_11 = arith.constant 0 : index
    %40 = vector.load %arg7[%c8, %c0_11] : memref<36x256xf32, #tpu.memory_space<vmem>>, vector<4x256xf32>
    tpu.vector_store %arg7[%c8, %c0_11], %39 {strides = array<i32>} : memref<36x256xf32, #tpu.memory_space<vmem>>, vector<4x256xf32>,
    %c1_i32_12 = arith.constant 1 : i32
    %41 = tpu.dynamic_rotate %31 by %c1_i32_12 dim 1 : vector<4x256xf32>, i32 -> vector<4x256xf32>
    %42 = arith.select %22, %41, %29 : vector<4x256xi1>, vector<4x256xf32>
    %c12 = arith.constant 12 : index
    %c0_13 = arith.constant 0 : index
    %43 = vector.load %arg7[%c12, %c0_13] : memref<36x256xf32, #tpu.memory_space<vmem>>, vector<4x256xf32>
    tpu.vector_store %arg7[%c12, %c0_13], %42 {strides = array<i32>} : memref<36x256xf32, #tpu.memory_space<vmem>>, vector<4x256xf32>,
    %c16 = arith.constant 16 : index
    %c0_14 = arith.constant 0 : index
    %44 = vector.load %arg7[%c16, %c0_14] : memref<36x256xf32, #tpu.memory_space<vmem>>, vector<4x256xf32>
    tpu.vector_store %arg7[%c16, %c0_14], %31 {strides = array<i32>} : memref<36x256xf32, #tpu.memory_space<vmem>>, vector<4x256xf32>,
    %c255_i32 = arith.constant 255 : i32
    %45 = tpu.dynamic_rotate %31 by %c255_i32 dim 1 : vector<4x256xf32>, i32 -> vector<4x256xf32>
    %46 = arith.select %24, %45, %29 : vector<4x256xi1>, vector<4x256xf32>
    %c20 = arith.constant 20 : index
    %c0_15 = arith.constant 0 : index
    %47 = vector.load %arg7[%c20, %c0_15] : memref<36x256xf32, #tpu.memory_space<vmem>>, vector<4x256xf32>
    tpu.vector_store %arg7[%c20, %c0_15], %46 {strides = array<i32>} : memref<36x256xf32, #tpu.memory_space<vmem>>, vector<4x256xf32>,
    %c241_i32 = arith.constant 241 : i32
    %48 = tpu.dynamic_rotate %31 by %c241_i32 dim 1 : vector<4x256xf32>, i32 -> vector<4x256xf32>
    %49 = arith.select %27, %48, %29 : vector<4x256xi1>, vector<4x256xf32>
    %c24 = arith.constant 24 : index
    %c0_16 = arith.constant 0 : index
    %50 = vector.load %arg7[%c24, %c0_16] : memref<36x256xf32, #tpu.memory_space<vmem>>, vector<4x256xf32>
    tpu.vector_store %arg7[%c24, %c0_16], %49 {strides = array<i32>} : memref<36x256xf32, #tpu.memory_space<vmem>>, vector<4x256xf32>,
    %c240_i32_17 = arith.constant 240 : i32
    %51 = tpu.dynamic_rotate %31 by %c240_i32_17 dim 1 : vector<4x256xf32>, i32 -> vector<4x256xf32>
    %52 = arith.select %20, %51, %29 : vector<4x256xi1>, vector<4x256xf32>
    %c28 = arith.constant 28 : index
    %c0_18 = arith.constant 0 : index
    %53 = vector.load %arg7[%c28, %c0_18] : memref<36x256xf32, #tpu.memory_space<vmem>>, vector<4x256xf32>
    tpu.vector_store %arg7[%c28, %c0_18], %52 {strides = array<i32>} : memref<36x256xf32, #tpu.memory_space<vmem>>, vector<4x256xf32>,
    %c239_i32 = arith.constant 239 : i32
    %54 = tpu.dynamic_rotate %31 by %c239_i32 dim 1 : vector<4x256xf32>, i32 -> vector<4x256xf32>
    %55 = arith.select %28, %54, %29 : vector<4x256xi1>, vector<4x256xf32>
    %c32 = arith.constant 32 : index
    %c0_19 = arith.constant 0 : index
    %56 = vector.load %arg7[%c32, %c0_19] : memref<36x256xf32, #tpu.memory_space<vmem>>, vector<4x256xf32>
    tpu.vector_store %arg7[%c32, %c0_19], %55 {strides = array<i32>} : memref<36x256xf32, #tpu.memory_space<vmem>>, vector<4x256xf32>,
    %c0_20 = arith.constant 0 : index
    %c0_21 = arith.constant 0 : index
    %57 = vector.load %arg2[%c0_20, %c0_21] : memref<4x36xf32, #tpu.memory_space<vmem>>, vector<4x36xf32>
    %c0_22 = arith.constant 0 : index
    %c0_23 = arith.constant 0 : index
    %58 = vector.load %arg7[%c0_22, %c0_23] : memref<36x256xf32, #tpu.memory_space<vmem>>, vector<36x256xf32>
    %cst_24 = arith.constant dense<0.000000e+00> : vector<4x256xf32>
    %59 = tpu.matmul %57, %58, %cst_24 {dimension_numbers = #tpu.dot_dimension_numbers<[1], [0], [0], [1], [0, 0, 1, 1], [], []>} : vector<4x36xf32>, vector<36x256xf32>, vector<4x256xf32> -> vector<4x256xf32>
    %c0_25 = arith.constant 0 : index
    %c0_26 = arith.constant 0 : index
    %60 = vector.load %arg3[%c0_25, %c0_26] : memref<4x1xf32, #tpu.memory_space<vmem>>, vector<4x1xf32>
    %61 = vector.broadcast %60 : vector<4x1xf32> to vector<4x256xf32>
    %62 = arith.addf %59, %61 : vector<4x256xf32>
    %cst_27 = arith.constant 0.000000e+00 : f32
    %63 = vector.broadcast %cst_27 : f32 to vector<4x256xf32>
    %64 = arith.maximumf %62, %63 : vector<4x256xf32>
    %c17_i32_28 = arith.constant 17 : i32
    %65 = tpu.dynamic_rotate %64 by %c17_i32_28 dim 1 : vector<4x256xf32>, i32 -> vector<4x256xf32>
    %66 = arith.select %25, %65, %29 : vector<4x256xi1>, vector<4x256xf32>
    %c0_29 = arith.constant 0 : index
    %c0_30 = arith.constant 0 : index
    %67 = vector.load %arg7[%c0_29, %c0_30] : memref<36x256xf32, #tpu.memory_space<vmem>>, vector<4x256xf32>
    tpu.vector_store %arg7[%c0_29, %c0_30], %66 {strides = array<i32>} : memref<36x256xf32, #tpu.memory_space<vmem>>, vector<4x256xf32>,
    %c16_i32_31 = arith.constant 16 : i32
    %68 = tpu.dynamic_rotate %64 by %c16_i32_31 dim 1 : vector<4x256xf32>, i32 -> vector<4x256xf32>
    %69 = arith.select %18, %68, %29 : vector<4x256xi1>, vector<4x256xf32>
    %c4_32 = arith.constant 4 : index
    %c0_33 = arith.constant 0 : index
    %70 = vector.load %arg7[%c4_32, %c0_33] : memref<36x256xf32, #tpu.memory_space<vmem>>, vector<4x256xf32>
    tpu.vector_store %arg7[%c4_32, %c0_33], %69 {strides = array<i32>} : memref<36x256xf32, #tpu.memory_space<vmem>>, vector<4x256xf32>,
    %c15_i32_34 = arith.constant 15 : i32
    %71 = tpu.dynamic_rotate %64 by %c15_i32_34 dim 1 : vector<4x256xf32>, i32 -> vector<4x256xf32>
    %72 = arith.select %26, %71, %29 : vector<4x256xi1>, vector<4x256xf32>
    %c8_35 = arith.constant 8 : index
    %c0_36 = arith.constant 0 : index
    %73 = vector.load %arg7[%c8_35, %c0_36] : memref<36x256xf32, #tpu.memory_space<vmem>>, vector<4x256xf32>
    tpu.vector_store %arg7[%c8_35, %c0_36], %72 {strides = array<i32>} : memref<36x256xf32, #tpu.memory_space<vmem>>, vector<4x256xf32>,
    %c1_i32_37 = arith.constant 1 : i32
    %74 = tpu.dynamic_rotate %64 by %c1_i32_37 dim 1 : vector<4x256xf32>, i32 -> vector<4x256xf32>
    %75 = arith.select %22, %74, %29 : vector<4x256xi1>, vector<4x256xf32>
    %c12_38 = arith.constant 12 : index
    %c0_39 = arith.constant 0 : index
    %76 = vector.load %arg7[%c12_38, %c0_39] : memref<36x256xf32, #tpu.memory_space<vmem>>, vector<4x256xf32>
    tpu.vector_store %arg7[%c12_38, %c0_39], %75 {strides = array<i32>} : memref<36x256xf32, #tpu.memory_space<vmem>>, vector<4x256xf32>,
    %c16_40 = arith.constant 16 : index
    %c0_41 = arith.constant 0 : index
    %77 = vector.load %arg7[%c16_40, %c0_41] : memref<36x256xf32, #tpu.memory_space<vmem>>, vector<4x256xf32>
    tpu.vector_store %arg7[%c16_40, %c0_41], %64 {strides = array<i32>} : memref<36x256xf32, #tpu.memory_space<vmem>>, vector<4x256xf32>,
    %c255_i32_42 = arith.constant 255 : i32
    %78 = tpu.dynamic_rotate %64 by %c255_i32_42 dim 1 : vector<4x256xf32>, i32 -> vector<4x256xf32>
    %79 = arith.select %24, %78, %29 : vector<4x256xi1>, vector<4x256xf32>
    %c20_43 = arith.constant 20 : index
    %c0_44 = arith.constant 0 : index
    %80 = vector.load %arg7[%c20_43, %c0_44] : memref<36x256xf32, #tpu.memory_space<vmem>>, vector<4x256xf32>
    tpu.vector_store %arg7[%c20_43, %c0_44], %79 {strides = array<i32>} : memref<36x256xf32, #tpu.memory_space<vmem>>, vector<4x256xf32>,
    %c241_i32_45 = arith.constant 241 : i32
    %81 = tpu.dynamic_rotate %64 by %c241_i32_45 dim 1 : vector<4x256xf32>, i32 -> vector<4x256xf32>
    %82 = arith.select %27, %81, %29 : vector<4x256xi1>, vector<4x256xf32>
    %c24_46 = arith.constant 24 : index
    %c0_47 = arith.constant 0 : index
    %83 = vector.load %arg7[%c24_46, %c0_47] : memref<36x256xf32, #tpu.memory_space<vmem>>, vector<4x256xf32>
    tpu.vector_store %arg7[%c24_46, %c0_47], %82 {strides = array<i32>} : memref<36x256xf32, #tpu.memory_space<vmem>>, vector<4x256xf32>,
    %c240_i32_48 = arith.constant 240 : i32
    %84 = tpu.dynamic_rotate %64 by %c240_i32_48 dim 1 : vector<4x256xf32>, i32 -> vector<4x256xf32>
    %85 = arith.select %20, %84, %29 : vector<4x256xi1>, vector<4x256xf32>
    %c28_49 = arith.constant 28 : index
    %c0_50 = arith.constant 0 : index
    %86 = vector.load %arg7[%c28_49, %c0_50] : memref<36x256xf32, #tpu.memory_space<vmem>>, vector<4x256xf32>
    tpu.vector_store %arg7[%c28_49, %c0_50], %85 {strides = array<i32>} : memref<36x256xf32, #tpu.memory_space<vmem>>, vector<4x256xf32>,
    %c239_i32_51 = arith.constant 239 : i32
    %87 = tpu.dynamic_rotate %64 by %c239_i32_51 dim 1 : vector<4x256xf32>, i32 -> vector<4x256xf32>
    %88 = arith.select %28, %87, %29 : vector<4x256xi1>, vector<4x256xf32>
    %c32_52 = arith.constant 32 : index
    %c0_53 = arith.constant 0 : index
    %89 = vector.load %arg7[%c32_52, %c0_53] : memref<36x256xf32, #tpu.memory_space<vmem>>, vector<4x256xf32>
    tpu.vector_store %arg7[%c32_52, %c0_53], %88 {strides = array<i32>} : memref<36x256xf32, #tpu.memory_space<vmem>>, vector<4x256xf32>,
    %c0_54 = arith.constant 0 : index
    %c0_55 = arith.constant 0 : index
    %90 = vector.load %arg4[%c0_54, %c0_55] : memref<4x36xf32, #tpu.memory_space<vmem>>, vector<4x36xf32>
    %c0_56 = arith.constant 0 : index
    %c0_57 = arith.constant 0 : index
    %91 = vector.load %arg7[%c0_56, %c0_57] : memref<36x256xf32, #tpu.memory_space<vmem>>, vector<36x256xf32>
    %cst_58 = arith.constant dense<0.000000e+00> : vector<4x256xf32>
    %92 = tpu.matmul %90, %91, %cst_58 {dimension_numbers = #tpu.dot_dimension_numbers<[1], [0], [0], [1], [0, 0, 1, 1], [], []>} : vector<4x36xf32>, vector<36x256xf32>, vector<4x256xf32> -> vector<4x256xf32>
    %c0_59 = arith.constant 0 : index
    %c0_60 = arith.constant 0 : index
    %93 = vector.load %arg5[%c0_59, %c0_60] : memref<4x1xf32, #tpu.memory_space<vmem>>, vector<4x1xf32>
    %94 = vector.broadcast %93 : vector<4x1xf32> to vector<4x256xf32>
    %95 = arith.addf %92, %94 : vector<4x256xf32>
    %96 = arith.addf %95, %31 : vector<4x256xf32>
    %c0_61 = arith.constant 0 : index
    %c0_62 = arith.constant 0 : index
    %c0_63 = arith.constant 0 : index
    %97 = vector.load %arg6[%c0_61, %c0_62, %c0_63] : memref<2x4x256xf32, #tpu.memory_space<vmem>>, vector<1x4x256xf32>
    %98 = vector.shape_cast %97 : vector<1x4x256xf32> to vector<4x256xf32>
    %99 = vector.shape_cast %96 : vector<4x256xf32> to vector<1x4x256xf32>
    tpu.vector_store %arg6[%c0_61, %c0_62, %c0_63], %99 {strides = array<i32>} : memref<2x4x256xf32, #tpu.memory_space<vmem>>, vector<1x4x256xf32>,
    %c1 = arith.constant 1 : index
    %c0_64 = arith.constant 0 : index
    %c0_65 = arith.constant 0 : index
    %100 = vector.load %arg1[%c1, %c0_64, %c0_65] : memref<2x4x256xf32, #tpu.memory_space<vmem>>, vector<1x4x256xf32>
    %101 = vector.shape_cast %100 : vector<1x4x256xf32> to vector<4x256xf32>
    %c17_i32_66 = arith.constant 17 : i32
    %102 = tpu.dynamic_rotate %101 by %c17_i32_66 dim 1 : vector<4x256xf32>, i32 -> vector<4x256xf32>
    %103 = arith.select %25, %102, %29 : vector<4x256xi1>, vector<4x256xf32>
    %c0_67 = arith.constant 0 : index
    %c0_68 = arith.constant 0 : index
    %104 = vector.load %arg7[%c0_67, %c0_68] : memref<36x256xf32, #tpu.memory_space<vmem>>, vector<4x256xf32>
    tpu.vector_store %arg7[%c0_67, %c0_68], %103 {strides = array<i32>} : memref<36x256xf32, #tpu.memory_space<vmem>>, vector<4x256xf32>,
    %c16_i32_69 = arith.constant 16 : i32
    %105 = tpu.dynamic_rotate %101 by %c16_i32_69 dim 1 : vector<4x256xf32>, i32 -> vector<4x256xf32>
    %106 = arith.select %18, %105, %29 : vector<4x256xi1>, vector<4x256xf32>
    %c4_70 = arith.constant 4 : index
    %c0_71 = arith.constant 0 : index
    %107 = vector.load %arg7[%c4_70, %c0_71] : memref<36x256xf32, #tpu.memory_space<vmem>>, vector<4x256xf32>
    tpu.vector_store %arg7[%c4_70, %c0_71], %106 {strides = array<i32>} : memref<36x256xf32, #tpu.memory_space<vmem>>, vector<4x256xf32>,
    %c15_i32_72 = arith.constant 15 : i32
    %108 = tpu.dynamic_rotate %101 by %c15_i32_72 dim 1 : vector<4x256xf32>, i32 -> vector<4x256xf32>
    %109 = arith.select %26, %108, %29 : vector<4x256xi1>, vector<4x256xf32>
    %c8_73 = arith.constant 8 : index
    %c0_74 = arith.constant 0 : index
    %110 = vector.load %arg7[%c8_73, %c0_74] : memref<36x256xf32, #tpu.memory_space<vmem>>, vector<4x256xf32>
    tpu.vector_store %arg7[%c8_73, %c0_74], %109 {strides = array<i32>} : memref<36x256xf32, #tpu.memory_space<vmem>>, vector<4x256xf32>,
    %c1_i32_75 = arith.constant 1 : i32
    %111 = tpu.dynamic_rotate %101 by %c1_i32_75 dim 1 : vector<4x256xf32>, i32 -> vector<4x256xf32>
    %112 = arith.select %22, %111, %29 : vector<4x256xi1>, vector<4x256xf32>
    %c12_76 = arith.constant 12 : index
    %c0_77 = arith.constant 0 : index
    %113 = vector.load %arg7[%c12_76, %c0_77] : memref<36x256xf32, #tpu.memory_space<vmem>>, vector<4x256xf32>
    tpu.vector_store %arg7[%c12_76, %c0_77], %112 {strides = array<i32>} : memref<36x256xf32, #tpu.memory_space<vmem>>, vector<4x256xf32>,
    %c16_78 = arith.constant 16 : index
    %c0_79 = arith.constant 0 : index
    %114 = vector.load %arg7[%c16_78, %c0_79] : memref<36x256xf32, #tpu.memory_space<vmem>>, vector<4x256xf32>
    tpu.vector_store %arg7[%c16_78, %c0_79], %101 {strides = array<i32>} : memref<36x256xf32, #tpu.memory_space<vmem>>, vector<4x256xf32>,
    %c255_i32_80 = arith.constant 255 : i32
    %115 = tpu.dynamic_rotate %101 by %c255_i32_80 dim 1 : vector<4x256xf32>, i32 -> vector<4x256xf32>
    %116 = arith.select %24, %115, %29 : vector<4x256xi1>, vector<4x256xf32>
    %c20_81 = arith.constant 20 : index
    %c0_82 = arith.constant 0 : index
    %117 = vector.load %arg7[%c20_81, %c0_82] : memref<36x256xf32, #tpu.memory_space<vmem>>, vector<4x256xf32>
    tpu.vector_store %arg7[%c20_81, %c0_82], %116 {strides = array<i32>} : memref<36x256xf32, #tpu.memory_space<vmem>>, vector<4x256xf32>,
    %c241_i32_83 = arith.constant 241 : i32
    %118 = tpu.dynamic_rotate %101 by %c241_i32_83 dim 1 : vector<4x256xf32>, i32 -> vector<4x256xf32>
    %119 = arith.select %27, %118, %29 : vector<4x256xi1>, vector<4x256xf32>
    %c24_84 = arith.constant 24 : index
    %c0_85 = arith.constant 0 : index
    %120 = vector.load %arg7[%c24_84, %c0_85] : memref<36x256xf32, #tpu.memory_space<vmem>>, vector<4x256xf32>
    tpu.vector_store %arg7[%c24_84, %c0_85], %119 {strides = array<i32>} : memref<36x256xf32, #tpu.memory_space<vmem>>, vector<4x256xf32>,
    %c240_i32_86 = arith.constant 240 : i32
    %121 = tpu.dynamic_rotate %101 by %c240_i32_86 dim 1 : vector<4x256xf32>, i32 -> vector<4x256xf32>
    %122 = arith.select %20, %121, %29 : vector<4x256xi1>, vector<4x256xf32>
    %c28_87 = arith.constant 28 : index
    %c0_88 = arith.constant 0 : index
    %123 = vector.load %arg7[%c28_87, %c0_88] : memref<36x256xf32, #tpu.memory_space<vmem>>, vector<4x256xf32>
    tpu.vector_store %arg7[%c28_87, %c0_88], %122 {strides = array<i32>} : memref<36x256xf32, #tpu.memory_space<vmem>>, vector<4x256xf32>,
    %c239_i32_89 = arith.constant 239 : i32
    %124 = tpu.dynamic_rotate %101 by %c239_i32_89 dim 1 : vector<4x256xf32>, i32 -> vector<4x256xf32>
    %125 = arith.select %28, %124, %29 : vector<4x256xi1>, vector<4x256xf32>
    %c32_90 = arith.constant 32 : index
    %c0_91 = arith.constant 0 : index
    %126 = vector.load %arg7[%c32_90, %c0_91] : memref<36x256xf32, #tpu.memory_space<vmem>>, vector<4x256xf32>
    tpu.vector_store %arg7[%c32_90, %c0_91], %125 {strides = array<i32>} : memref<36x256xf32, #tpu.memory_space<vmem>>, vector<4x256xf32>,
    %c0_92 = arith.constant 0 : index
    %c0_93 = arith.constant 0 : index
    %127 = vector.load %arg2[%c0_92, %c0_93] : memref<4x36xf32, #tpu.memory_space<vmem>>, vector<4x36xf32>
    %c0_94 = arith.constant 0 : index
    %c0_95 = arith.constant 0 : index
    %128 = vector.load %arg7[%c0_94, %c0_95] : memref<36x256xf32, #tpu.memory_space<vmem>>, vector<36x256xf32>
    %cst_96 = arith.constant dense<0.000000e+00> : vector<4x256xf32>
    %129 = tpu.matmul %127, %128, %cst_96 {dimension_numbers = #tpu.dot_dimension_numbers<[1], [0], [0], [1], [0, 0, 1, 1], [], []>} : vector<4x36xf32>, vector<36x256xf32>, vector<4x256xf32> -> vector<4x256xf32>
    %c0_97 = arith.constant 0 : index
    %c0_98 = arith.constant 0 : index
    %130 = vector.load %arg3[%c0_97, %c0_98] : memref<4x1xf32, #tpu.memory_space<vmem>>, vector<4x1xf32>
    %131 = vector.broadcast %130 : vector<4x1xf32> to vector<4x256xf32>
    %132 = arith.addf %129, %131 : vector<4x256xf32>
    %cst_99 = arith.constant 0.000000e+00 : f32
    %133 = vector.broadcast %cst_99 : f32 to vector<4x256xf32>
    %134 = arith.maximumf %132, %133 : vector<4x256xf32>
    %c17_i32_100 = arith.constant 17 : i32
    %135 = tpu.dynamic_rotate %134 by %c17_i32_100 dim 1 : vector<4x256xf32>, i32 -> vector<4x256xf32>
    %136 = arith.select %25, %135, %29 : vector<4x256xi1>, vector<4x256xf32>
    %c0_101 = arith.constant 0 : index
    %c0_102 = arith.constant 0 : index
    %137 = vector.load %arg7[%c0_101, %c0_102] : memref<36x256xf32, #tpu.memory_space<vmem>>, vector<4x256xf32>
    tpu.vector_store %arg7[%c0_101, %c0_102], %136 {strides = array<i32>} : memref<36x256xf32, #tpu.memory_space<vmem>>, vector<4x256xf32>,
    %c16_i32_103 = arith.constant 16 : i32
    %138 = tpu.dynamic_rotate %134 by %c16_i32_103 dim 1 : vector<4x256xf32>, i32 -> vector<4x256xf32>
    %139 = arith.select %18, %138, %29 : vector<4x256xi1>, vector<4x256xf32>
    %c4_104 = arith.constant 4 : index
    %c0_105 = arith.constant 0 : index
    %140 = vector.load %arg7[%c4_104, %c0_105] : memref<36x256xf32, #tpu.memory_space<vmem>>, vector<4x256xf32>
    tpu.vector_store %arg7[%c4_104, %c0_105], %139 {strides = array<i32>} : memref<36x256xf32, #tpu.memory_space<vmem>>, vector<4x256xf32>,
    %c15_i32_106 = arith.constant 15 : i32
    %141 = tpu.dynamic_rotate %134 by %c15_i32_106 dim 1 : vector<4x256xf32>, i32 -> vector<4x256xf32>
    %142 = arith.select %26, %141, %29 : vector<4x256xi1>, vector<4x256xf32>
    %c8_107 = arith.constant 8 : index
    %c0_108 = arith.constant 0 : index
    %143 = vector.load %arg7[%c8_107, %c0_108] : memref<36x256xf32, #tpu.memory_space<vmem>>, vector<4x256xf32>
    tpu.vector_store %arg7[%c8_107, %c0_108], %142 {strides = array<i32>} : memref<36x256xf32, #tpu.memory_space<vmem>>, vector<4x256xf32>,
    %c1_i32_109 = arith.constant 1 : i32
    %144 = tpu.dynamic_rotate %134 by %c1_i32_109 dim 1 : vector<4x256xf32>, i32 -> vector<4x256xf32>
    %145 = arith.select %22, %144, %29 : vector<4x256xi1>, vector<4x256xf32>
    %c12_110 = arith.constant 12 : index
    %c0_111 = arith.constant 0 : index
    %146 = vector.load %arg7[%c12_110, %c0_111] : memref<36x256xf32, #tpu.memory_space<vmem>>, vector<4x256xf32>
    tpu.vector_store %arg7[%c12_110, %c0_111], %145 {strides = array<i32>} : memref<36x256xf32, #tpu.memory_space<vmem>>, vector<4x256xf32>,
    %c16_112 = arith.constant 16 : index
    %c0_113 = arith.constant 0 : index
    %147 = vector.load %arg7[%c16_112, %c0_113] : memref<36x256xf32, #tpu.memory_space<vmem>>, vector<4x256xf32>
    tpu.vector_store %arg7[%c16_112, %c0_113], %134 {strides = array<i32>} : memref<36x256xf32, #tpu.memory_space<vmem>>, vector<4x256xf32>,
    %c255_i32_114 = arith.constant 255 : i32
    %148 = tpu.dynamic_rotate %134 by %c255_i32_114 dim 1 : vector<4x256xf32>, i32 -> vector<4x256xf32>
    %149 = arith.select %24, %148, %29 : vector<4x256xi1>, vector<4x256xf32>
    %c20_115 = arith.constant 20 : index
    %c0_116 = arith.constant 0 : index
    %150 = vector.load %arg7[%c20_115, %c0_116] : memref<36x256xf32, #tpu.memory_space<vmem>>, vector<4x256xf32>
    tpu.vector_store %arg7[%c20_115, %c0_116], %149 {strides = array<i32>} : memref<36x256xf32, #tpu.memory_space<vmem>>, vector<4x256xf32>,
    %c241_i32_117 = arith.constant 241 : i32
    %151 = tpu.dynamic_rotate %134 by %c241_i32_117 dim 1 : vector<4x256xf32>, i32 -> vector<4x256xf32>
    %152 = arith.select %27, %151, %29 : vector<4x256xi1>, vector<4x256xf32>
    %c24_118 = arith.constant 24 : index
    %c0_119 = arith.constant 0 : index
    %153 = vector.load %arg7[%c24_118, %c0_119] : memref<36x256xf32, #tpu.memory_space<vmem>>, vector<4x256xf32>
    tpu.vector_store %arg7[%c24_118, %c0_119], %152 {strides = array<i32>} : memref<36x256xf32, #tpu.memory_space<vmem>>, vector<4x256xf32>,
    %c240_i32_120 = arith.constant 240 : i32
    %154 = tpu.dynamic_rotate %134 by %c240_i32_120 dim 1 : vector<4x256xf32>, i32 -> vector<4x256xf32>
    %155 = arith.select %20, %154, %29 : vector<4x256xi1>, vector<4x256xf32>
    %c28_121 = arith.constant 28 : index
    %c0_122 = arith.constant 0 : index
    %156 = vector.load %arg7[%c28_121, %c0_122] : memref<36x256xf32, #tpu.memory_space<vmem>>, vector<4x256xf32>
    tpu.vector_store %arg7[%c28_121, %c0_122], %155 {strides = array<i32>} : memref<36x256xf32, #tpu.memory_space<vmem>>, vector<4x256xf32>,
    %c239_i32_123 = arith.constant 239 : i32
    %157 = tpu.dynamic_rotate %134 by %c239_i32_123 dim 1 : vector<4x256xf32>, i32 -> vector<4x256xf32>
    %158 = arith.select %28, %157, %29 : vector<4x256xi1>, vector<4x256xf32>
    %c32_124 = arith.constant 32 : index
    %c0_125 = arith.constant 0 : index
    %159 = vector.load %arg7[%c32_124, %c0_125] : memref<36x256xf32, #tpu.memory_space<vmem>>, vector<4x256xf32>
    tpu.vector_store %arg7[%c32_124, %c0_125], %158 {strides = array<i32>} : memref<36x256xf32, #tpu.memory_space<vmem>>, vector<4x256xf32>,
    %c0_126 = arith.constant 0 : index
    %c0_127 = arith.constant 0 : index
    %160 = vector.load %arg4[%c0_126, %c0_127] : memref<4x36xf32, #tpu.memory_space<vmem>>, vector<4x36xf32>
    %c0_128 = arith.constant 0 : index
    %c0_129 = arith.constant 0 : index
    %161 = vector.load %arg7[%c0_128, %c0_129] : memref<36x256xf32, #tpu.memory_space<vmem>>, vector<36x256xf32>
    %cst_130 = arith.constant dense<0.000000e+00> : vector<4x256xf32>
    %162 = tpu.matmul %160, %161, %cst_130 {dimension_numbers = #tpu.dot_dimension_numbers<[1], [0], [0], [1], [0, 0, 1, 1], [], []>} : vector<4x36xf32>, vector<36x256xf32>, vector<4x256xf32> -> vector<4x256xf32>
    %c0_131 = arith.constant 0 : index
    %c0_132 = arith.constant 0 : index
    %163 = vector.load %arg5[%c0_131, %c0_132] : memref<4x1xf32, #tpu.memory_space<vmem>>, vector<4x1xf32>
    %164 = vector.broadcast %163 : vector<4x1xf32> to vector<4x256xf32>
    %165 = arith.addf %162, %164 : vector<4x256xf32>
    %166 = arith.addf %165, %101 : vector<4x256xf32>
    %c1_133 = arith.constant 1 : index
    %c0_134 = arith.constant 0 : index
    %c0_135 = arith.constant 0 : index
    %167 = vector.load %arg6[%c1_133, %c0_134, %c0_135] : memref<2x4x256xf32, #tpu.memory_space<vmem>>, vector<1x4x256xf32>
    %168 = vector.shape_cast %167 : vector<1x4x256xf32> to vector<4x256xf32>
    %169 = vector.shape_cast %166 : vector<4x256xf32> to vector<1x4x256xf32>
    tpu.vector_store %arg6[%c1_133, %c0_134, %c0_135], %169 {strides = array<i32>} : memref<2x4x256xf32, #tpu.memory_space<vmem>>, vector<1x4x256xf32>,
    return
  }
  func.func @transform_0(%arg0: i32) -> (i32, i32, i32) {
    %c0_i32 = arith.constant 0 : i32
    %c0_i32_0 = arith.constant 0 : i32
    %c0_i32_1 = arith.constant 0 : i32
    return %arg0, %c0_i32, %c0_i32_0 : i32, i32, i32
  }
  func.func @transform_1(%arg0: i32) -> (i32, i32) {
    %c0_i32 = arith.constant 0 : i32
    %c0_i32_0 = arith.constant 0 : i32
    %c0_i32_1 = arith.constant 0 : i32
    return %c0_i32, %c0_i32_0 : i32, i32
  }
  func.func @transform_2(%arg0: i32) -> (i32, i32) {
    %c0_i32 = arith.constant 0 : i32
    %c0_i32_0 = arith.constant 0 : i32
    %c0_i32_1 = arith.constant 0 : i32
    return %c0_i32, %c0_i32_0 : i32, i32
  }
  func.func @transform_3(%arg0: i32) -> (i32, i32) {
    %c0_i32 = arith.constant 0 : i32
    %c0_i32_0 = arith.constant 0 : i32
    %c0_i32_1 = arith.constant 0 : i32
    return %c0_i32, %c0_i32_0 : i32, i32
  }
  func.func @transform_4(%arg0: i32) -> (i32, i32) {
    %c0_i32 = arith.constant 0 : i32
    %c0_i32_0 = arith.constant 0 : i32
    %c0_i32_1 = arith.constant 0 : i32
    return %c0_i32, %c0_i32_0 : i32, i32
  }
  func.func @transform_5(%arg0: i32) -> (i32, i32, i32) {
    %c0_i32 = arith.constant 0 : i32
    %c0_i32_0 = arith.constant 0 : i32
    %c0_i32_1 = arith.constant 0 : i32
    return %arg0, %c0_i32, %c0_i32_0 : i32, i32, i32
  }
}

</mosaic_0001>

<bundles_post_ra>
// kernel: resblock_forward.1
= control target key start
LH: loop header
LB: loop body
LE: loop exit
PB: predicated region body
PF: predicated region fallthrough
CT: control target
= control target key end

     0   :  { %s1257_s18 = smov 0   ;;  %s1764_s0 = inlined_call_operand.vmem [shape: f32[4,4,256], index: 0, kind: input, shape index: {}]   ;;  %s1765_s1 = inlined_call_operand.vmem [shape: f32[4,36], index: 1, kind: input, shape index: {}]   ;;  %s1766_s2 = inlined_call_operand.vmem [shape: f32[4,1], index: 2, kind: input, shape index: {}]   ;;  %s1767_s3 = inlined_call_operand.vmem [shape: f32[4,36], index: 3, kind: input, shape index: {}]   ;;  %s1768_s4 = inlined_call_operand.vmem [shape: f32[4,1], index: 4, kind: input, shape index: {}]   ;;  %s1769_s5 = inlined_call_operand.vmem [shape: f32[4,4,256], index: 5, kind: output, shape index: {}]  }
   0x1 LB: > { %s1158_s19 = sadd.s32 4294967295, %s1216_s18   ;;  %p1162_p0 = scmp.ge.s32.totalorder %s1216_s18, 1  ;;  %s1216_s18 = sphi %s1257_s18, %s15_s18  }
   0x2   : > { %p189_p1 = scmp.lt.s32.totalorder %s1216_s18, 3 }
   0x4   : > { %p190_p2 = pnand %p1162_p0, %p189_p1 }
   0x5   : > { %s1163_s20 = sshll.u32 (!%p190_p2), %s1158_s19, 1  ;;  %s1218_s25 = smov (!%p190_p2), 16  }
   0x6   : > { %193 = sbr.rel (%p190_p2) target bundleno = 966 (0x3c6), region = 40  ;;  %p220_p3 = scmp.lt.s32.totalorder (!%p190_p2), %s1163_s20, 3 }
   0x7   : > { %s1219_s26 = smov (!%p190_p2), 15   ;;  %s1220_s27 = smov (!%p190_p2), 1  }
   0x8   : > { %s1221_s28 = smov (!%p190_p2), 127   ;;  %s1222_s29 = smov (!%p190_p2), 113  }
   0x9   : > { %s1223_s30 = smov (!%p190_p2), 112   ;;  %s1224_s6 = smov (!%p190_p2), 17  }
   0xa   : > { %s1225_s7 = smov (!%p190_p2), 111  }
   0xb   : > { %s1823_s20 = smov (!%p220_p3, %s1163_s20), 3  ;;  %v233_v25 = vlaneseq }
   0xc   : > { %s1189_s21 = sshll.u32 %s1823_s20, 3 }
   0xd   : > { %s1273_s24 = scalar_lea.vmem %s1764_s0, %s1189_s21  ;;  %v1305_v26 = vand.u32 127, %v233_v25 }
   0xe   : > { %v276_v0 = vld [vmem:[%s1273_s24] sm:$0xff]  ;;  %v1290_v19 = vld [vmem:[%s1273_s24 + $0x8] sm:$0xff] }
   0xf   : > { %278 = vst [vmem:[#allocation1] ss:$2 sm:$0xff] %v276_v0  ;;  %vm1776_vm0 = vcmp.lt.s32.totalorder %v1305_v26, 16  ;;  %vm1772_vm1 = vcmp.ge.s32.totalorder %v1305_v26, 16  ;;  %v1316_v34 = vadd.s32 128, %v1305_v26  ;;  %v240_v37 = vand.u32 15, %v1305_v26 }
  0x10   : > { %vm1777_vm2 = vcmp.lt.s32.totalorder %v1305_v26, 1  ;;  %vm370_vm7 = vcmp.lt.s32.totalorder %v1305_v26, 127  ;;  %vm1771_vm9 = vcmp.lt.s32.totalorder %v1305_v26, 113  ;;  %vm408_vm11 = vcmp.lt.s32.totalorder %v1305_v26, 112 }
  0x11   : > { %v247_v38 = vand.u32 15, %v1316_v34  ;;  %vm1323_vm3 = vcmp.ge.s32.totalorder %v240_v37, 1  ;;  %vm1331_vm5 = vcmp.le.s32.totalorder %v240_v37, 14  ;;  %vm263_vm8 = vcmp.lt.s32.totalorder %v1316_v34, 240 }
  0x12   : > { %vm1770_vm12 = vcmp.lt.s32.totalorder %v1305_v26, 17  ;;  %vm1774_vm13 = vcmp.lt.s32.totalorder %v1305_v26, 111  ;;  %vm1392_vm14 = vmand %vm1772_vm1, %vm1323_vm3 }
  0x13   : > { %vm1327_vm4 = vcmp.ge.s32.totalorder %v247_v38, 1  ;;  %vm1335_vm6 = vcmp.le.s32.totalorder %v247_v38, 14 }
  0x14   : > { %vm1362_vm10 = vmand %vm263_vm8, %vm1327_vm4 }
  0x15   : > { %vm1400_vm15 = vmand %vm263_vm8, %vm1335_vm6 }
  0x16   : > { %v279_v1 = vld.sshfl [vmem:[#allocation1] sm:$0xff pattern:$0x75316420]  ;;  %v280_v2 = vld.sshfl [vmem:[#allocation1 + $0x8] sm:$0xff pattern:$0x75316420] }
  0x17   : > { %294 = vst [vmem:[#allocation1] ss:$2 sm:$0xff] %v276_v0 }
  0x1e   : > { %v295_v3 = vld.sshfl [vmem:[#allocation1] sm:$0xff pattern:$0x75316420]  ;;  %v296_v4 = vld.sshfl [vmem:[#allocation1 + $0x8] sm:$0xff pattern:$0x75316420] }
  0x1f   : > { %316 = vst [vmem:[#allocation1] ss:$2 sm:$0xff] %v276_v0  ;;  %299 = vrot.lane.b32.xlu1 %v295_v3, %s1218_s25  ;;  %301 = vrot.lane.b32.xlu2 %v296_v4, %s1218_s25 }
  0x26   : > { %v317_v5 = vld.sshfl [vmem:[#allocation1] sm:$0xff pattern:$0x75316420]  ;;  %v318_v6 = vld.sshfl [vmem:[#allocation1 + $0x8] sm:$0xff pattern:$0x75316420] }
  0x27   : > { %321 = vrot.lane.b32.xlu0 %v317_v5, %s1219_s26  ;;  %332 = vst [vmem:[#allocation1] ss:$2 sm:$0xff] %v276_v0  ;;  %v1226_v5 = vmov 0  }
  0x28   : > { %1208 = vset.pattern.permute.xlu1 %v1226_v5  ;;  %1209 = vset.pattern.permute.xlu0 %v1226_v5 }
  0x2e   : > { %v334_v7 = vld.sshfl [vmem:[#allocation1 + $0x8] sm:$0xff pattern:$0x75316420]  ;;  %v333_v8 = vld.sshfl [vmem:[#allocation1] sm:$0xff pattern:$0x75316420] }
  0x2f   : > { %339 = vrot.lane.b32.xlu0 %v334_v7, %s1220_s27  ;;  %354 = vst [vmem:[#allocation1] ss:$2 sm:$0xff] %v276_v0  ;;  %337 = vrot.lane.b32.xlu2 %v333_v8, %s1220_s27 }
  0x36   : > { %v355_v9 = vld.sshfl [vmem:[#allocation1] sm:$0xff pattern:$0x75316420]  ;;  %v356_v10 = vld.sshfl [vmem:[#allocation1 + $0x8] sm:$0xff pattern:$0x75316420] }
  0x37   : > { %361 = vst [vmem:[#allocation1] ss:$2 sm:$0xff] %v276_v0 }
  0x38   : > { %359 = vst [vmem:[#allocation2 + $0x48] sm:$0xf] %v355_v9 }
  0x39   : > { %360 = vst [vmem:[#allocation2 + $0x28] sm:$0xf] %v356_v10 }
  0x3e   : > { %v362_v11 = vld.sshfl [vmem:[#allocation1] sm:$0xff pattern:$0x75316420]  ;;  %v363_v12 = vld.sshfl [vmem:[#allocation1 + $0x8] sm:$0xff pattern:$0x75316420] }
  0x3f   : > { %383 = vst [vmem:[#allocation1] ss:$2 sm:$0xff] %v276_v0  ;;  %366 = vrot.lane.b32.xlu2 %v362_v11, %s1221_s28 }
  0x46   : > { %v384_v13 = vld.sshfl [vmem:[#allocation1] sm:$0xff pattern:$0x75316420]  ;;  %v385_v14 = vld.sshfl [vmem:[#allocation1 + $0x8] sm:$0xff pattern:$0x75316420] }
  0x47   : > { %388 = vrot.lane.b32.xlu0 %v384_v13, %s1222_s29  ;;  %390 = vrot.lane.b32.xlu1 %v385_v14, %s1222_s29  ;;  %399 = vst [vmem:[#allocation1] ss:$2 sm:$0xff] %v276_v0  ;;  %v1020_v13 = vld [vmem:[%s1767_s3] sm:$0xf] }
  0x48   : > { %368 = vrot.lane.b32.xlu2 %v363_v12, %s1221_s28 }
  0x4e   : > { %v400_v15 = vld.sshfl [vmem:[#allocation1] sm:$0xff pattern:$0x75316420]  ;;  %v401_v16 = vld.sshfl [vmem:[#allocation1 + $0x8] sm:$0xff pattern:$0x75316420] }
  0x4f   : > { %404 = vrot.lane.b32.xlu0 %v400_v15, %s1223_s30  ;;  %421 = vst [vmem:[#allocation1] ss:$2 sm:$0xff] %v276_v0 }
  0x50   : > { %283 = vrot.lane.b32.xlu2 %v279_v1, %s1224_s6  ;;  %v448_v1 = vld [vmem:[%s1766_s2] sm:$0xf] }
  0x56   : > { %v422_v17 = vld.sshfl [vmem:[#allocation1] sm:$0xff pattern:$0x75316420]  ;;  %v423_v18 = vld.sshfl [vmem:[#allocation1 + $0x8] sm:$0xff pattern:$0x75316420] }
  0x57   : > { %406 = vrot.lane.b32.xlu0 %v401_v16, %s1223_s30  ;;  %426 = vrot.lane.b32.xlu1 %v422_v17, %s1225_s7  ;;  %679 = vst [vmem:[#allocation1] ss:$2 sm:$0xff] %v276_v0 }
  0x5e   : > { %v1292_v20 = vld.sshfl [vmem:[#allocation1] sm:$0xff pattern:$0x75316420]  ;;  %v1294_v21 = vld.sshfl [vmem:[#allocation1 + $0x8] sm:$0xff pattern:$0x75316420] }
  0x5f   : > { %285 = vrot.lane.b32.xlu0 %v280_v2, %s1224_s6  ;;  %428 = vrot.lane.b32.xlu1 %v423_v18, %s1225_s7  ;;  %695 = vst [vmem:[#allocation1] ss:$2 sm:$0xff] %v1290_v19 }
  0x66   : > { %v1299_v22 = vld.sshfl [vmem:[#allocation1] sm:$0xff pattern:$0x75316420]  ;;  %v1301_v23 = vld.sshfl [vmem:[#allocation1 + $0x8] sm:$0xff pattern:$0x75316420] }
  0x67   : > { %710 = vst [vmem:[#allocation1] ss:$2 sm:$0xff] %v1290_v19  ;;  %323 = vrot.lane.b32.xlu1 %v318_v6, %s1219_s26 }
  0x6e   : > { %v711_v2 = vld.sshfl [vmem:[#allocation1] sm:$0xff pattern:$0x75316420]  ;;  %v712_v6 = vld.sshfl [vmem:[#allocation1 + $0x8] sm:$0xff pattern:$0x75316420] }
  0x6f   : > { %451 = vperm.xlu1 %1208, %v448_v1   ;;  %717 = vrot.lane.b32.xlu2 %v712_v6, %s1218_s25  ;;  %731 = vst [vmem:[#allocation1] ss:$2 sm:$0xff] %v1290_v19 }
  0x76   : > { %v1404_v17 = vld.sshfl [vmem:[#allocation1] sm:$0xff pattern:$0x75316420]  ;;  %v1406_v18 = vld.sshfl [vmem:[#allocation1 + $0x8] sm:$0xff pattern:$0x75316420] }
  0x77   : > { %715 = vrot.lane.b32.xlu1 %v711_v2, %s1218_s25  ;;  %746 = vst [vmem:[#allocation1] ss:$2 sm:$0xff] %v1290_v19 }
  0x79   : > { %v302_v24 = vpop.permute.xlu2 %301 }
  0x89   : > { %v338_v27 = vpop.permute.xlu2 %337 }
  0x91   : > { %v300_v28 = vpop.permute.xlu1 %299 }
  0x92   : > { %v304_v29 = vsel %vm1776_vm0, %v300_v28, %v302_v24  ;;  %v305_v30 = vsel %vm1776_vm0, %v302_v24, %v300_v28 }
  0x93   : > { %v306_v31 = vsel %vm1772_vm1, %v305_v30, 0.0  ;;  %v311_v32 = vrot.slane %v304_v29, 4 }
  0x94   : > { %v310_v33 = vrot.slane %v306_v31, 4 }
  0x95   : > { %315 = vst [vmem:[#allocation2] sm:$0xf0] %v311_v32 }
  0x96   : > { %314 = vst [vmem:[#allocation2 + $0x30] sm:$0xf0] %v310_v33 }
  0x99   : > { %v1318_v35 = vpop.permute.xlu0 %321  ;;  %v367_v36 = vpop.permute.xlu2 %366 }
  0xa1   : > { %v340_v41 = vpop.permute.xlu0 %339 }
  0xa2   : > { %v342_v44 = vsel %vm1777_vm2, %v338_v27, %v340_v41  ;;  %v343_v45 = vsel %vm1777_vm2, %v340_v41, %v338_v27  ;;  %v369_v46 = vpop.permute.xlu2 %368  ;;  %v748_v41 = vld.sshfl [vmem:[#allocation1 + $0x8] sm:$0xff pattern:$0x75316420] }
  0xa3   : > { %v344_v47 = vsel %vm1323_vm3, %v343_v45, 0.0  ;;  %v345_v48 = vsel %vm1327_vm4, %v342_v44, 0.0  ;;  %v371_v49 = vsel %vm370_vm7, %v367_v36, %v369_v46  ;;  %v372_v50 = vsel %vm370_vm7, %v369_v46, %v367_v36  ;;  %v747_v44 = vld.sshfl [vmem:[#allocation1] sm:$0xff pattern:$0x75316420]  ;;  %753 = vrot.lane.b32.xlu0 %v748_v41, %s1220_s27 }
  0xa4   : > { %v348_v51 = vrot.slane %v344_v47, 4  ;;  %v349_v52 = vrot.slane %v345_v48, 4  ;;  %v373_v53 = vsel %vm1331_vm5, %v371_v49, 0.0  ;;  %v374_v54 = vsel %vm1335_vm6, %v372_v50, 0.0  ;;  %767 = vst [vmem:[#allocation1] ss:$2 sm:$0xff] %v1290_v19  ;;  %751 = vrot.lane.b32.xlu2 %v747_v44, %s1220_s27 }
  0xa5   : > { %v377_v55 = vrot.slane %v373_v53, 4  ;;  %v378_v56 = vrot.slane %v374_v54, 4 }
  0xa6   : > { %352 = vst [vmem:[#allocation2 + $0x18] sm:$0xf0] %v348_v51 }
  0xa7   : > { %353 = vst [vmem:[#allocation2 + $0x10] sm:$0xf0] %v349_v52 }
  0xa8   : > { %381 = vst [vmem:[#allocation2 + $0x48] sm:$0xf0] %v377_v55 }
  0xa9   : > { %382 = vst [vmem:[#allocation2 + $0x28] sm:$0xf0] %v378_v56  ;;  %v437_v56 = vld [vmem:[%s1765_s1] sm:$0xf] }
  0xaa   : > { %v284_v12 = vpop.permute.xlu2 %283 }
  0xab   : > { %v1450_v52 = vld.sshfl [vmem:[#allocation1] sm:$0xff pattern:$0x75316420]  ;;  %v1452_v53 = vld.sshfl [vmem:[#allocation1 + $0x8] sm:$0xff pattern:$0x75316420] }
  0xac   : > { %774 = vst [vmem:[#allocation1] ss:$2 sm:$0xff] %v1290_v19 }
  0xaf   : > { %v442_v50 = vld [vmem:[#allocation2 + $0x48] sm:$0xff] }
  0xb0   : > { %v443_v51 = vld [vmem:[#allocation2 + $0x28] sm:$0xff] }
  0xb9   : > { %v389_v58 = vpop.permute.xlu0 %388  ;;  %v391_v59 = vpop.permute.xlu1 %390 }
  0xba   : > { %v393_v60 = vsel %vm1771_vm9, %v389_v58, %v391_v59  ;;  %v394_v61 = vsel %vm1771_vm9, %v391_v59, %v389_v58  ;;  %vm1431_vm9 = vmand %vm1772_vm1, %vm1331_vm5  ;;  %vm458_vm1 = vcmask 1043456  }
  0xbb   : > { %v395_v62 = vsel %vm1323_vm3, %v393_v60, 0.0  ;;  %v396_v63 = vsel %vm1362_vm10, %v394_v61, 0.0  ;;  %v775_v60 = vld.sshfl [vmem:[#allocation1] sm:$0xff pattern:$0x75316420] }
  0xbc   : > { %397 = vst [vmem:[#allocation2 + $0x8] sm:$0xf] %v395_v62  ;;  %v776_v61 = vld.sshfl [vmem:[#allocation1 + $0x8] sm:$0xff pattern:$0x75316420]  ;;  %779 = vrot.lane.b32.xlu1 %v775_v60, %s1221_s28 }
  0xbd   : > { %398 = vst [vmem:[#allocation2 + $0x20] sm:$0xf] %v396_v63  ;;  %781 = vrot.lane.b32.xlu2 %v776_v61, %s1221_s28 }
  0xbe   : > { %795 = vst [vmem:[#allocation1] ss:$2 sm:$0xff] %v1290_v19 }
  0xc1   : > { %v405_v0 = vpop.permute.xlu0 %404 }
  0xc5   : > { %v797_v62 = vld.sshfl [vmem:[#allocation1 + $0x8] sm:$0xff pattern:$0x75316420]  ;;  %v796_v63 = vld.sshfl [vmem:[#allocation1] sm:$0xff pattern:$0x75316420] }
  0xc6   : > { %802 = vrot.lane.b32.xlu1 %v797_v62, %s1222_s29  ;;  %800 = vrot.lane.b32.xlu0 %v796_v63, %s1222_s29  ;;  %810 = vst [vmem:[#allocation1] ss:$2 sm:$0xff] %v1290_v19 }
  0xc9   : > { %v407_v3 = vpop.permute.xlu0 %406  ;;  %v427_v4 = vpop.permute.xlu1 %426 }
  0xca   : > { %v409_v7 = vsel %vm408_vm11, %v405_v0, %v407_v3  ;;  %v410_v8 = vsel %vm408_vm11, %v407_v3, %v405_v0 }
  0xcb   : > { %v412_v9 = vsel %vm263_vm8, %v410_v8, 0.0  ;;  %v415_v10 = vrot.slane %v409_v7, 4 }
  0xcc   : > { %v416_v11 = vrot.slane %v412_v9, 4 }
  0xcd   : > { %419 = vst [vmem:[#allocation2 + $0x8] sm:$0xf0] %v415_v10  ;;  %v812_v0 = vld.sshfl [vmem:[#allocation1 + $0x8] sm:$0xff pattern:$0x75316420] }
  0xce   : > { %420 = vst [vmem:[#allocation2 + $0x20] sm:$0xf0] %v416_v11  ;;  %v811_v1 = vld.sshfl [vmem:[#allocation1] sm:$0xff pattern:$0x75316420]  ;;  %817 = vrot.lane.b32.xlu1 %v812_v0, %s1223_s30 }
  0xcf   : > { %815 = vrot.lane.b32.xlu0 %v811_v1, %s1223_s30  ;;  %831 = vst [vmem:[#allocation1] ss:$2 sm:$0xff] %v1290_v19 }
  0xd1   : > { %v286_v14 = vpop.permute.xlu0 %285  ;;  %v429_v16 = vpop.permute.xlu1 %428 }
  0xd2   : > { %v288_v24 = vsel %vm1770_vm12, %v284_v12, %v286_v14  ;;  %v289_v25 = vsel %vm1770_vm12, %v286_v14, %v284_v12  ;;  %v431_v27 = vsel %vm1774_vm13, %v427_v4, %v429_v16  ;;  %v432_v28 = vsel %vm1774_vm13, %v429_v16, %v427_v4 }
  0xd3   : > { %v290_v29 = vsel %vm1392_vm14, %v289_v25, 0.0  ;;  %v291_v30 = vsel %vm1327_vm4, %v288_v24, 0.0  ;;  %v433_v31 = vsel %vm1331_vm5, %v431_v27, 0.0  ;;  %v434_v32 = vsel %vm1400_vm15, %v432_v28, 0.0  ;;  %v857_v28 = vld [vmem:[%s1766_s2] sm:$0xf] }
  0xd4   : > { %292 = vst [vmem:[#allocation2 + $0x30] sm:$0xf] %v290_v29  ;;  %vm1773_vm12 = vcmp.lt.s32.totalorder %v1305_v26, 15  ;;  %v444_v48 = vld [vmem:[#allocation2 + $0x8] sm:$0xff] }
  0xd5   : > { %293 = vst [vmem:[#allocation2] sm:$0xf] %v291_v30  ;;  %v445_v49 = vld [vmem:[#allocation2 + $0x20] sm:$0xff] }
  0xd6   : > { %435 = vst [vmem:[#allocation2 + $0x40] sm:$0xf] %v433_v31  ;;  %v833_v2 = vld.sshfl [vmem:[#allocation1 + $0x8] sm:$0xff pattern:$0x75316420] }
  0xd7   : > { %436 = vst [vmem:[#allocation2 + $0x38] sm:$0xf] %v434_v32  ;;  %v832_v3 = vld.sshfl [vmem:[#allocation1] sm:$0xff pattern:$0x75316420]  ;;  %838 = vrot.lane.b32.xlu0 %v833_v2, %s1225_s7 }
  0xd8   : > { %836 = vrot.lane.b32.xlu2 %v832_v3, %s1225_s7  ;;  %1086 = vst [vmem:[#allocation1] ss:$2 sm:$0xff] %v1290_v19  ;;  %v718_v19 = vpop.permute.xlu2 %717 }
  0xd9   : > { %v324_v36 = vpop.permute.xlu1 %323 }
  0xda   : > { %v326_v37 = vsel %vm1773_vm12, %v1318_v35, %v324_v36  ;;  %v327_v38 = vsel %vm1773_vm12, %v324_v36, %v1318_v35  ;;  %vm1775_vm12 = vcmask 293888  }
  0xdb   : > { %v328_v45 = vsel %vm1431_vm9, %v327_v38, 0.0  ;;  %v329_v46 = vsel %vm1335_vm6, %v326_v37, 0.0  ;;  %v438_v58 = vld [vmem:[#allocation2 + $0x30] sm:$0xff] }
  0xdc   : > { %330 = vst [vmem:[#allocation2 + $0x18] sm:$0xf] %v328_v45  ;;  %v439_v59 = vld [vmem:[#allocation2] sm:$0xff] }
  0xdd   : > { %331 = vst [vmem:[#allocation2 + $0x10] sm:$0xf] %v329_v46  ;;  %v446_v47 = vld [vmem:[#allocation2 + $0x40] sm:$0xf] }
  0xde   : > { %1169 = vmatpush.msk.msra.mxu0 %vm458_vm1, %v446_v47  ;;  %v447_v35 = vld [vmem:[#allocation2 + $0x38] sm:$0xf] }
  0xdf   : > { %1171 = vmatpush.msk.msra.mxu1 %vm458_vm1, %v447_v35 }
  0xe0   : > { %477 = vmatpush.msra.mxu0 %v444_v48 }
  0xe1   : > { %497 = vmatpush.msra.mxu1 %v445_v49  ;;  %v452_v4 = vpop.permute.xlu1 %451 }
  0xe2   : > { %478 = vmatpush.msra.mxu0 %v442_v50 }
  0xe3   : > { %498 = vmatpush.msra.mxu1 %v443_v51  ;;  %v440_v54 = vld [vmem:[#allocation2 + $0x18] sm:$0xff] }
  0xe4   : > { %479 = vmatpush.msra.mxu0 %v440_v54  ;;  %v441_v55 = vld [vmem:[#allocation2 + $0x10] sm:$0xff] }
  0xe5   : > { %499 = vmatpush.msra.mxu1 %v441_v55 }
  0xe6   : > { %480 = vmatpush.msra.mxu0 %v438_v58 }
  0xe7   : > { %500 = vmatpush.msra.mxu1 %v439_v59  ;;  %1170 = vmatmul.msk.f32.vlgmr.msra.gmra.mxu0 %vm1775_vm12, %v437_v56 }
  0xe8   : > { %1172 = vmatmul.msk.f32.vlgmr.msra.gmra.mxu1 %vm1775_vm12, %v437_v56 }
  0xe9   : > { %v716_v11 = vpop.permute.xlu1 %715 }
  0xea   : > { %v1483_v12 = vsel %vm1776_vm0, %v716_v11, %v718_v19  ;;  %v1487_v14 = vsel %vm1776_vm0, %v718_v19, %v716_v11 }
  0xfe   : > { %v752_v24 = vpop.permute.xlu2 %751 }
 0x115   : > { %v754_v16 = vpop.permute.xlu0 %753 }
 0x116   : > { %v1494_v25 = vsel %vm1777_vm2, %v752_v24, %v754_v16  ;;  %v1498_v27 = vsel %vm1777_vm2, %v754_v16, %v752_v24 }
 0x117   : > { %v782_v29 = vpop.permute.xlu2 %781 }
 0x132   : > { %v837_v31 = vpop.permute.xlu2 %836 }
 0x138   : > { %v1515_v30 = vpop.permute.xlu0 %800 }
 0x141   : > { %v1517_v32 = vpop.permute.xlu0 %815 }
 0x149   : > { %v839_v37 = vpop.permute.xlu0 %838 }
 0x14a   : > { %v840_v55 = vsel %vm1774_vm13, %v837_v31, %v839_v37  ;;  %v841_v56 = vsel %vm1774_vm13, %v839_v37, %v837_v31 }
 0x14b   : > { %v842_v60 = vsel %vm1331_vm5, %v840_v55, 0.0  ;;  %v843_v61 = vsel %vm1400_vm15, %v841_v56, 0.0 }
 0x164   : > { %v482_v5 = vpop.f32.mrf.mxu0 }
 0x165   : > { %v502_v6 = vpop.f32.mrf.mxu1  ;;  %v483_v7 = vadd.f32 %v482_v5, %v452_v4 }
 0x166   : > { %v503_v8 = vadd.f32 %v502_v6, %v452_v4 }
 0x167   : > { %v505_v9 = vmax.f32 %v483_v7, 0.0 }
 0x168   : > { %v506_v10 = vmax.f32 %v503_v8, 0.0 }
 0x169   : > { %559 = vst [vmem:[#allocation2 + $0x48] sm:$0xf] %v505_v9  ;;  %603 = vrot.lane.b32.xlu1 %v505_v9, %s1225_s7  ;;  %587 = vrot.lane.b32.xlu2 %v505_v9, %s1223_s30 }
 0x16a   : > { %560 = vst [vmem:[#allocation2 + $0x28] sm:$0xf] %v506_v10  ;;  %589 = vrot.lane.b32.xlu0 %v506_v10, %s1223_s30 }
 0x171   : > { %563 = vrot.lane.b32.xlu1 %v506_v10, %s1221_s28  ;;  %605 = vrot.lane.b32.xlu2 %v506_v10, %s1225_s7 }
 0x172   : > { %561 = vrot.lane.b32.xlu0 %v505_v9, %s1221_s28 }
 0x179   : > { %543 = vrot.lane.b32.xlu1 %v505_v9, %s1220_s27  ;;  %577 = vrot.lane.b32.xlu2 %v505_v9, %s1222_s29 }
 0x17a   : > { %579 = vrot.lane.b32.xlu0 %v506_v10, %s1222_s29 }
 0x181   : > { %519 = vrot.lane.b32.xlu1 %v506_v10, %s1218_s25  ;;  %545 = vrot.lane.b32.xlu2 %v506_v10, %s1220_s27 }
 0x182   : > { %517 = vrot.lane.b32.xlu0 %v505_v9, %s1218_s25 }
 0x189   : > { %507 = vrot.lane.b32.xlu1 %v505_v9, %s1224_s6  ;;  %533 = vrot.lane.b32.xlu2 %v505_v9, %s1219_s26 }
 0x18a   : > { %535 = vrot.lane.b32.xlu0 %v506_v10, %s1219_s26 }
 0x191   : > { %738 = vrot.lane.b32.xlu1 %v1406_v18, %s1219_s26  ;;  %509 = vrot.lane.b32.xlu2 %v506_v10, %s1224_s6  ;;  %v780_v18 = vpop.permute.xlu1 %779 }
 0x192   : > { %736 = vrot.lane.b32.xlu0 %v1404_v17, %s1219_s26  ;;  %v783_v8 = vsel %vm370_vm7, %v780_v18, %v782_v29  ;;  %v784_v9 = vsel %vm370_vm7, %v782_v29, %v780_v18 }
 0x199   : > { %860 = vperm.xlu1 %1208, %v857_v28   ;;  %700 = vrot.lane.b32.xlu2 %v1299_v22, %s1224_s6  ;;  %v1519_v36 = vpop.permute.xlu1 %802 }
 0x19a   : > { %702 = vrot.lane.b32.xlu0 %v1301_v23, %s1224_s6 }
 0x1a1   : > { %v1521_v38 = vpop.permute.xlu1 %817 }
 0x1a2   : > { %v819_v55 = vsel %vm408_vm11, %v1517_v32, %v1521_v38 }
 0x1c3   : > { %v588_v17 = vpop.permute.xlu2 %587 }
 0x1cb   : > { %v606_v41 = vpop.permute.xlu2 %605 }
 0x1d3   : > { %v578_v46 = vpop.permute.xlu2 %577 }
 0x1db   : > { %v604_v44 = vpop.permute.xlu1 %603  ;;  %v546_v4 = vpop.permute.xlu2 %545 }
 0x1dc   : > { %v590_v45 = vpop.permute.xlu0 %589  ;;  %v607_v22 = vsel %vm1774_vm13, %v604_v44, %v606_v41  ;;  %v608_v23 = vsel %vm1774_vm13, %v606_v41, %v604_v44  ;;  %vm1794_vm13 = vcmp.lt.s32.totalorder %v1305_v26, 113 }
 0x1dd   : > { %v591_v47 = vsel %vm408_vm11, %v588_v17, %v590_v45  ;;  %v592_v35 = vsel %vm408_vm11, %v590_v45, %v588_v17  ;;  %v609_v48 = vsel %vm1331_vm5, %v607_v22, 0.0  ;;  %v610_v49 = vsel %vm1400_vm15, %v608_v23, 0.0  ;;  %vm1795_vm12 = vmmov %vm1794_vm13 }
 0x1de   : > { %v594_v50 = vsel %vm263_vm8, %v592_v35, 0.0  ;;  %v597_v51 = vrot.slane %v591_v47, 4  ;;  %611 = vst [vmem:[#allocation2 + $0x40] sm:$0xf] %v609_v48  ;;  %v785_v45 = vsel %vm1331_vm5, %v783_v8, 0.0  ;;  %v786_v23 = vsel %vm1335_vm6, %v784_v9, 0.0 }
 0x1df   : > { %v598_v54 = vrot.slane %v594_v50, 4  ;;  %612 = vst [vmem:[#allocation2 + $0x38] sm:$0xf] %v610_v49  ;;  %v789_v47 = vrot.slane %v785_v45, 4  ;;  %v804_v48 = vsel %vm1795_vm12, %v1515_v30, %v1519_v36  ;;  %v790_v50 = vrot.slane %v786_v23, 4 }
 0x1e0   : > { %601 = vst [vmem:[#allocation2 + $0x8] sm:$0xf0] %v597_v51  ;;  %v820_v51 = vsel %vm408_vm11, %v1521_v38, %v1517_v32  ;;  %v805_v32 = vsel %vm1795_vm12, %v1519_v36, %v1515_v30 }
 0x1e1   : > { %602 = vst [vmem:[#allocation2 + $0x20] sm:$0xf0] %v598_v54  ;;  %v822_v38 = vsel %vm263_vm8, %v820_v51, 0.0 }
 0x1e3   : > { %v564_v58 = vpop.permute.xlu1 %563 }
 0x1e4   : > { %v562_v59 = vpop.permute.xlu0 %561 }
 0x1e5   : > { %v565_v62 = vsel %vm370_vm7, %v562_v59, %v564_v58  ;;  %v566_v63 = vsel %vm370_vm7, %v564_v58, %v562_v59  ;;  %v622_v0 = vld [vmem:[#allocation2 + $0x40] sm:$0xf] }
 0x1e6   : > { %v567_v1 = vsel %vm1331_vm5, %v565_v62, 0.0  ;;  %v568_v2 = vsel %vm1335_vm6, %v566_v63, 0.0  ;;  %1173 = vmatpush.msk.msra.mxu2 %vm458_vm1, %v622_v0  ;;  %844 = vst [vmem:[#allocation2 + $0x40] sm:$0xf] %v842_v60  ;;  %v623_v3 = vld [vmem:[#allocation2 + $0x38] sm:$0xf] }
 0x1e7   : > { %v571_v5 = vrot.slane %v567_v1, 4  ;;  %v572_v6 = vrot.slane %v568_v2, 4  ;;  %1175 = vmatpush.msk.msra.mxu3 %vm458_vm1, %v623_v3  ;;  %845 = vst [vmem:[#allocation2 + $0x38] sm:$0xf] %v843_v61  ;;  %v825_v63 = vrot.slane %v819_v55, 4  ;;  %v807_v0 = vsel %vm1362_vm10, %v805_v32, 0.0 }
 0x1e8   : > { %v826_v1 = vrot.slane %v822_v38, 4 }
 0x1e9   : > { %575 = vst [vmem:[#allocation2 + $0x48] sm:$0xf0] %v571_v5 }
 0x1ea   : > { %576 = vst [vmem:[#allocation2 + $0x28] sm:$0xf0] %v572_v6 }
 0x1eb   : > { %v544_v7 = vpop.permute.xlu1 %543 }
 0x1ec   : > { %v580_v10 = vpop.permute.xlu0 %579  ;;  %v547_v19 = vsel %vm1777_vm2, %v544_v7, %v546_v4  ;;  %v548_v11 = vsel %vm1777_vm2, %v546_v4, %v544_v7 }
 0x1ed   : > { %v581_v16 = vsel %vm1794_vm13, %v578_v46, %v580_v10  ;;  %v582_v24 = vsel %vm1795_vm12, %v580_v10, %v578_v46  ;;  %v549_v28 = vsel %vm1323_vm3, %v548_v11, 0.0  ;;  %v550_v31 = vsel %vm1327_vm4, %v547_v19, 0.0  ;;  %v855_v29 = vld [vmem:[#allocation2 + $0x40] sm:$0xf]  ;;  %v534_v46 = vpop.permute.xlu2 %533 }
 0x1ee   : > { %v583_v18 = vsel %vm1323_vm3, %v581_v16, 0.0  ;;  %v584_v17 = vsel %vm1362_vm10, %v582_v24, 0.0  ;;  %v553_v37 = vrot.slane %v549_v28, 4  ;;  %v554_v41 = vrot.slane %v550_v31, 4  ;;  %1178 = vmatpush.msk.msrb.mxu0 %vm458_vm1, %v855_v29  ;;  %v856_v44 = vld [vmem:[#allocation2 + $0x38] sm:$0xf] }
 0x1ef   : > { %585 = vst [vmem:[#allocation2 + $0x8] sm:$0xf] %v583_v18  ;;  %1180 = vmatpush.msk.msrb.mxu1 %vm458_vm1, %v856_v44  ;;  %vm1796_vm13 = vcmp.ge.s32.totalorder %v1305_v26, 16  ;;  %v757_v16 = vsel %vm1323_vm3, %v1498_v27, 0.0 }
 0x1f0   : > { %586 = vst [vmem:[#allocation2 + $0x20] sm:$0xf] %v584_v17  ;;  %v618_v22 = vld [vmem:[#allocation2 + $0x48] sm:$0xff]  ;;  %v758_v17 = vsel %vm1327_vm4, %v1494_v25, 0.0  ;;  %v761_v27 = vrot.slane %v757_v16, 4 }
 0x1f1   : > { %557 = vst [vmem:[#allocation2 + $0x18] sm:$0xf0] %v553_v37  ;;  %v619_v35 = vld [vmem:[#allocation2 + $0x28] sm:$0xff]  ;;  %v613_v16 = vld [vmem:[%s1767_s3] sm:$0xf] }
 0x1f2   : > { %558 = vst [vmem:[#allocation2 + $0x10] sm:$0xf0] %v554_v41 }
 0x1f3   : > { %v520_v49 = vpop.permute.xlu1 %519  ;;  %772 = vst [vmem:[#allocation2 + $0x48] sm:$0xf] %v1450_v52  ;;  %v806_v52 = vsel %vm1323_vm3, %v804_v48, 0.0 }
 0x1f4   : > { %v518_v54 = vpop.permute.xlu0 %517  ;;  %793 = vst [vmem:[#allocation2 + $0x48] sm:$0xf0] %v789_v47 }
 0x1f5   : > { %v521_v56 = vsel %vm1776_vm0, %v518_v54, %v520_v49  ;;  %v522_v58 = vsel %vm1776_vm0, %v520_v49, %v518_v54  ;;  %773 = vst [vmem:[#allocation2 + $0x28] sm:$0xf] %v1452_v53  ;;  %v510_v2 = vpop.permute.xlu2 %509  ;;  %vm1799_vm0 = vcmp.lt.s32.totalorder %v1305_v26, 15 }
 0x1f6   : > { %v523_v59 = vsel %vm1796_vm13, %v522_v58, 0.0  ;;  %v528_v60 = vrot.slane %v521_v56, 4  ;;  %v620_v61 = vld [vmem:[#allocation2 + $0x8] sm:$0xff]  ;;  %794 = vst [vmem:[#allocation2 + $0x28] sm:$0xf0] %v790_v50  ;;  %vm1797_vm13 = vcmp.lt.s32.totalorder %v1305_v26, 17  ;;  %vm1800_vm2 = vmmov %vm1799_vm0 }
 0x1f7   : > { %v527_v62 = vrot.slane %v523_v59, 4  ;;  %651 = vmatpush.msra.mxu2 %v620_v61  ;;  %808 = vst [vmem:[#allocation2 + $0x8] sm:$0xf] %v806_v52  ;;  %v621_v53 = vld [vmem:[#allocation2 + $0x20] sm:$0xff]  ;;  %vm1798_vm12 = vmmov %vm1797_vm13  ;;  %v846_v58 = vld [vmem:[%s1765_s1] sm:$0xf] }
 0x1f8   : > { %532 = vst [vmem:[#allocation2] sm:$0xf0] %v528_v60  ;;  %671 = vmatpush.msra.mxu3 %v621_v53 }
 0x1f9   : > { %531 = vst [vmem:[#allocation2 + $0x30] sm:$0xf0] %v527_v62  ;;  %652 = vmatpush.msra.mxu2 %v618_v22 }
 0x1fa   : > { %829 = vst [vmem:[#allocation2 + $0x8] sm:$0xf0] %v825_v63  ;;  %672 = vmatpush.msra.mxu3 %v619_v35  ;;  %v726_v35 = vrot.slane %v1483_v12, 4 }
 0x1fb   : > { %809 = vst [vmem:[#allocation2 + $0x20] sm:$0xf] %v807_v0  ;;  %v508_v30 = vpop.permute.xlu1 %507  ;;  %v851_v28 = vld [vmem:[#allocation2 + $0x48] sm:$0xff]  ;;  %v1031_v0 = vld [vmem:[%s1768_s4] sm:$0xf] }
 0x1fc   : > { %830 = vst [vmem:[#allocation2 + $0x20] sm:$0xf0] %v826_v1  ;;  %v536_v36 = vpop.permute.xlu0 %535  ;;  %v511_v3 = vsel %vm1797_vm13, %v508_v30, %v510_v2  ;;  %v512_v4 = vsel %vm1798_vm12, %v510_v2, %v508_v30  ;;  %vm1802_vm13 = vmmov %vm1800_vm2 }
 0x1fd   : > { %v537_v5 = vsel %vm1799_vm0, %v534_v46, %v536_v36  ;;  %v538_v6 = vsel %vm1800_vm2, %v536_v36, %v534_v46  ;;  %v513_v7 = vsel %vm1392_vm14, %v512_v4, 0.0  ;;  %v514_v10 = vsel %vm1327_vm4, %v511_v3, 0.0  ;;  %v852_v37 = vld [vmem:[#allocation2 + $0x28] sm:$0xff]  ;;  %v701_v48 = vpop.permute.xlu2 %700 }
 0x1fe   : > { %v539_v8 = vsel %vm1431_vm9, %v538_v6, 0.0  ;;  %v540_v9 = vsel %vm1335_vm6, %v537_v5, 0.0  ;;  %515 = vst [vmem:[#allocation2 + $0x30] sm:$0xf] %v513_v7  ;;  %vm1801_vm0 = vcmp.ge.s32.totalorder %v1305_v26, 16  ;;  %v762_v46 = vrot.slane %v758_v17, 4 }
 0x1ff   : > { %541 = vst [vmem:[#allocation2 + $0x18] sm:$0xf] %v539_v8  ;;  %v721_v19 = vsel %vm1801_vm0, %v1487_v14, 0.0  ;;  %vm1803_vm0 = vmmov %vm1798_vm12 }
 0x200   : > { %542 = vst [vmem:[#allocation2 + $0x10] sm:$0xf] %v540_v9  ;;  %v725_v29 = vrot.slane %v721_v19, 4 }
 0x201   : > { %516 = vst [vmem:[#allocation2] sm:$0xf] %v514_v10  ;;  %v853_v11 = vld [vmem:[#allocation2 + $0x8] sm:$0xff] }
 0x202   : > { %884 = vmatpush.msrb.mxu0 %v853_v11 }
 0x203   : > { %v854_v24 = vld [vmem:[#allocation2 + $0x20] sm:$0xff]  ;;  %v739_v31 = vpop.permute.xlu1 %738 }
 0x204   : > { %904 = vmatpush.msrb.mxu1 %v854_v24  ;;  %885 = vmatpush.msrb.mxu0 %v851_v28  ;;  %v737_v18 = vpop.permute.xlu0 %736 }
 0x205   : > { %v740_v14 = vsel %vm1800_vm2, %v737_v18, %v739_v31  ;;  %v741_v41 = vsel %vm1802_vm13, %v739_v31, %v737_v18  ;;  %v614_v44 = vld [vmem:[#allocation2 + $0x30] sm:$0xff]  ;;  %vm1804_vm2 = vcmask 293888  }
 0x206   : > { %905 = vmatpush.msrb.mxu1 %v852_v37  ;;  %v742_v45 = vsel %vm1431_vm9, %v741_v41, 0.0  ;;  %v743_v22 = vsel %vm1335_vm6, %v740_v14, 0.0  ;;  %v616_v23 = vld [vmem:[#allocation2 + $0x18] sm:$0xff]  ;;  %729 = vst [vmem:[#allocation2 + $0x30] sm:$0xf0] %v725_v29  ;;  %vm1805_vm13 = vmmov %vm1804_vm2 }
 0x207   : > { %653 = vmatpush.msra.mxu2 %v616_v23  ;;  %744 = vst [vmem:[#allocation2 + $0x18] sm:$0xf] %v742_v45  ;;  %v617_v25 = vld [vmem:[#allocation2 + $0x10] sm:$0xff] }
 0x208   : > { %765 = vst [vmem:[#allocation2 + $0x18] sm:$0xf0] %v761_v27  ;;  %673 = vmatpush.msra.mxu3 %v617_v25  ;;  %v615_v47 = vld [vmem:[#allocation2] sm:$0xff] }
 0x209   : > { %745 = vst [vmem:[#allocation2 + $0x10] sm:$0xf] %v743_v22  ;;  %654 = vmatpush.msra.mxu2 %v614_v44  ;;  %v624_v44 = vld [vmem:[%s1768_s4] sm:$0xf] }
 0x20a   : > { %766 = vst [vmem:[#allocation2 + $0x10] sm:$0xf0] %v762_v46  ;;  %674 = vmatpush.msra.mxu3 %v615_v47  ;;  %1174 = vmatmul.msk.f32.vlgmr.msra.gmra.mxu2 %vm1804_vm2, %v613_v16 }
 0x20b   : > { %730 = vst [vmem:[#allocation2] sm:$0xf0] %v726_v35  ;;  %v861_v60 = vpop.permute.xlu1 %860 }
 0x20c   : > { %v703_v49 = vpop.permute.xlu0 %702 }
 0x20d   : > { %v704_v50 = vsel %vm1798_vm12, %v701_v48, %v703_v49  ;;  %v705_v51 = vsel %vm1803_vm0, %v703_v49, %v701_v48  ;;  %vm1806_vm12 = vcmp.lt.s32.totalorder %v1305_v26, 111 }
 0x20e   : > { %v706_v54 = vsel %vm1392_vm14, %v705_v51, 0.0  ;;  %v707_v55 = vsel %vm1327_vm4, %v704_v50, 0.0  ;;  %vm1807_vm0 = vmmov %vm1806_vm12 }
 0x20f   : > { %708 = vst [vmem:[#allocation2 + $0x30] sm:$0xf] %v706_v54  ;;  %v849_v12 = vld [vmem:[#allocation2 + $0x18] sm:$0xff] }
 0x210   : > { %709 = vst [vmem:[#allocation2] sm:$0xf] %v707_v55  ;;  %886 = vmatpush.msrb.mxu0 %v849_v12 }
 0x211   : > { %v850_v56 = vld [vmem:[#allocation2 + $0x10] sm:$0xff] }
 0x212   : > { %906 = vmatpush.msrb.mxu1 %v850_v56 }
 0x216   : > { %v847_v52 = vld [vmem:[#allocation2 + $0x30] sm:$0xff] }
 0x217   : > { %887 = vmatpush.msrb.mxu0 %v847_v52  ;;  %v848_v59 = vld [vmem:[#allocation2] sm:$0xff] }
 0x218   : > { %907 = vmatpush.msrb.mxu1 %v848_v59  ;;  %1179 = vmatmul.msk.f32.vlgmr.msrb.gmra.mxu0 %vm1804_vm2, %v846_v58 }
 0x219   : > { %1181 = vmatmul.msk.f32.vlgmr.msrb.gmra.mxu1 %vm1805_vm13, %v846_v58  ;;  %vm1813_vm13 = vcmp.lt.s32.totalorder %v1305_v26, 15 }
 0x295   : > { %v889_v61 = vpop.f32.mrf.mxu0 }
 0x296   : > { %v890_v32 = vadd.f32 %v889_v61, %v861_v60  ;;  %v909_v38 = vpop.f32.mrf.mxu1 }
 0x297   : > { %v910_v62 = vadd.f32 %v909_v38, %v861_v60 }
 0x298   : > { %v912_v53 = vmax.f32 %v890_v32, 0.0 }
 0x299   : > { %v913_v63 = vmax.f32 %v910_v62, 0.0 }
 0x29a   : > { %966 = vst [vmem:[#allocation2 + $0x48] sm:$0xf] %v912_v53  ;;  %1010 = vrot.lane.b32.xlu1 %v912_v53, %s1225_s7  ;;  %994 = vrot.lane.b32.xlu2 %v912_v53, %s1223_s30 }
 0x29b   : > { %967 = vst [vmem:[#allocation2 + $0x28] sm:$0xf] %v913_v63  ;;  %996 = vrot.lane.b32.xlu0 %v913_v63, %s1223_s30 }
 0x2a2   : > { %970 = vrot.lane.b32.xlu1 %v913_v63, %s1221_s28  ;;  %1012 = vrot.lane.b32.xlu2 %v913_v63, %s1225_s7 }
 0x2a3   : > { %968 = vrot.lane.b32.xlu0 %v912_v53, %s1221_s28 }
 0x2aa   : > { %950 = vrot.lane.b32.xlu1 %v912_v53, %s1220_s27  ;;  %984 = vrot.lane.b32.xlu2 %v912_v53, %s1222_s29 }
 0x2ab   : > { %986 = vrot.lane.b32.xlu0 %v913_v63, %s1222_s29  ;;  %s231_s29 = scalar_lea.vmem %s1769_s5, %s1189_s21 }
 0x2b2   : > { %942 = vrot.lane.b32.xlu1 %v913_v63, %s1219_s26  ;;  %952 = vrot.lane.b32.xlu2 %v913_v63, %s1220_s27 }
 0x2b3   : > { %940 = vrot.lane.b32.xlu0 %v912_v53, %s1219_s26 }
 0x2ba   : > { %914 = vrot.lane.b32.xlu1 %v912_v53, %s1224_s6  ;;  %924 = vrot.lane.b32.xlu2 %v912_v53, %s1218_s25 }
 0x2bb   : > { %926 = vrot.lane.b32.xlu0 %v913_v63, %s1218_s25 }
 0x2c2   : > { %1034 = vperm.xlu1 %1208, %v1031_v0   ;;  %916 = vrot.lane.b32.xlu2 %v913_v63, %s1224_s6 }
 0x2c3   : > { %627 = vperm.xlu0 %1209, %v624_v44  }
 0x2f4   : > { %v995_v1 = vpop.permute.xlu2 %994 }
 0x2fc   : > { %v1013_v2 = vpop.permute.xlu2 %1012 }
 0x304   : > { %v985_v5 = vpop.permute.xlu2 %984 }
 0x30c   : > { %v1011_v30 = vpop.permute.xlu1 %1010  ;;  %v953_v37 = vpop.permute.xlu2 %952 }
 0x30d   : > { %v997_v36 = vpop.permute.xlu0 %996  ;;  %v1014_v3 = vsel %vm1806_vm12, %v1011_v30, %v1013_v2  ;;  %v1015_v4 = vsel %vm1807_vm0, %v1013_v2, %v1011_v30  ;;  %vm1814_vm12 = vmmov %vm1813_vm13  ;;  %vm1819_vm0 = vcmp.ge.s32.totalorder %v1305_v26, 16 }
 0x30e   : > { %v998_v6 = vsel %vm408_vm11, %v995_v1, %v997_v36  ;;  %v999_v7 = vsel %vm408_vm11, %v997_v36, %v995_v1  ;;  %v1016_v8 = vsel %vm1331_vm5, %v1014_v3, 0.0  ;;  %v1017_v9 = vsel %vm1400_vm15, %v1015_v4, 0.0  ;;  %vm1808_vm11 = vmmov %vm1804_vm2 }
 0x30f   : > { %v1001_v10 = vsel %vm263_vm8, %v999_v7, 0.0  ;;  %v1004_v19 = vrot.slane %v998_v6, 4  ;;  %1018 = vst [vmem:[#allocation2 + $0x40] sm:$0xf] %v1016_v8  ;;  %1176 = vmatmul.msk.f32.vlgmr.msra.gmra.mxu3 %vm1808_vm11, %v613_v16  ;;  %vm1811_vm8 = vcmp.lt.s32.totalorder %v1305_v26, 113  ;;  %v656_v6 = vpop.f32.mrf.mxu2 }
 0x310   : > { %v1005_v11 = vrot.slane %v1001_v10, 4  ;;  %1019 = vst [vmem:[#allocation2 + $0x38] sm:$0xf] %v1017_v9  ;;  %vm1812_vm15 = vmmov %vm1811_vm8 }
 0x311   : > { %1008 = vst [vmem:[#allocation2 + $0x8] sm:$0xf0] %v1004_v19 }
 0x312   : > { %1009 = vst [vmem:[#allocation2 + $0x20] sm:$0xf0] %v1005_v11 }
 0x314   : > { %v971_v24 = vpop.permute.xlu1 %970  ;;  %v925_v51 = vpop.permute.xlu2 %924 }
 0x315   : > { %v969_v15 = vpop.permute.xlu0 %968 }
 0x316   : > { %v972_v34 = vsel %vm370_vm7, %v969_v15, %v971_v24  ;;  %v973_v28 = vsel %vm370_vm7, %v971_v24, %v969_v15  ;;  %v1029_v31 = vld [vmem:[#allocation2 + $0x40] sm:$0xf] }
 0x317   : > { %v974_v29 = vsel %vm1331_vm5, %v972_v34, 0.0  ;;  %v975_v18 = vsel %vm1335_vm6, %v973_v28, 0.0  ;;  %1182 = vmatpush.msk.msrb.mxu2 %vm458_vm1, %v1029_v31  ;;  %v1030_v17 = vld [vmem:[#allocation2 + $0x38] sm:$0xf]  ;;  %vm1809_vm5 = vcmp.lt.s32.totalorder %v1305_v26, 1 }
 0x318   : > { %v978_v14 = vrot.slane %v974_v29, 4  ;;  %v979_v41 = vrot.slane %v975_v18, 4  ;;  %1184 = vmatpush.msk.msrb.mxu3 %vm458_vm1, %v1030_v17  ;;  %vm1810_vm7 = vmmov %vm1809_vm5  ;;  %v1088_v15 = vld.sshfl [vmem:[#allocation1 + $0x8] sm:$0xff pattern:$0x75316420] }
 0x319   : > { %v1087_v31 = vld.sshfl [vmem:[#allocation1] sm:$0xff pattern:$0x75316420] }
 0x31a   : > { %982 = vst [vmem:[#allocation2 + $0x48] sm:$0xf0] %v978_v14 }
 0x31b   : > { %983 = vst [vmem:[#allocation2 + $0x28] sm:$0xf0] %v979_v41 }
 0x31c   : > { %v951_v27 = vpop.permute.xlu1 %950  ;;  %v917_v61 = vpop.permute.xlu2 %916 }
 0x31d   : > { %v987_v42 = vpop.permute.xlu0 %986  ;;  %v954_v45 = vsel %vm1809_vm5, %v951_v27, %v953_v37  ;;  %v955_v22 = vsel %vm1810_vm7, %v953_v37, %v951_v27 }
 0x31e   : > { %v988_v23 = vsel %vm1811_vm8, %v985_v5, %v987_v42  ;;  %v989_v25 = vsel %vm1812_vm15, %v987_v42, %v985_v5  ;;  %v956_v46 = vsel %vm1323_vm3, %v955_v22, 0.0  ;;  %v957_v47 = vsel %vm1327_vm4, %v954_v45, 0.0 }
 0x31f   : > { %v990_v35 = vsel %vm1323_vm3, %v988_v23, 0.0  ;;  %v991_v48 = vsel %vm1362_vm10, %v989_v25, 0.0  ;;  %v960_v49 = vrot.slane %v956_v46, 4  ;;  %v961_v50 = vrot.slane %v957_v47, 4 }
 0x320   : > { %992 = vst [vmem:[#allocation2 + $0x8] sm:$0xf] %v990_v35  ;;  %vm1815_vm3 = vcmp.lt.s32.totalorder %v1305_v26, 17 }
 0x321   : > { %993 = vst [vmem:[#allocation2 + $0x20] sm:$0xf] %v991_v48  ;;  %v1025_v59 = vld [vmem:[#allocation2 + $0x48] sm:$0xff] }
 0x322   : > { %964 = vst [vmem:[#allocation2 + $0x18] sm:$0xf0] %v960_v49  ;;  %v1026_v60 = vld [vmem:[#allocation2 + $0x28] sm:$0xff] }
 0x323   : > { %965 = vst [vmem:[#allocation2 + $0x10] sm:$0xf0] %v961_v50 }
 0x324   : > { %v943_v54 = vpop.permute.xlu1 %942 }
 0x325   : > { %v941_v55 = vpop.permute.xlu0 %940 }
 0x326   : > { %v944_v12 = vsel %vm1813_vm13, %v941_v55, %v943_v54  ;;  %v945_v56 = vsel %vm1814_vm12, %v943_v54, %v941_v55 }
 0x327   : > { %v946_v39 = vsel %vm1431_vm9, %v945_v56, 0.0  ;;  %v947_v57 = vsel %vm1335_vm6, %v944_v12, 0.0  ;;  %v1027_v58 = vld [vmem:[#allocation2 + $0x8] sm:$0xff]  ;;  %vm1816_vm9 = vmmov %vm1815_vm3  ;;  %vm1817_vm6 = vcmp.lt.s32.totalorder %v1305_v26, 16 }
 0x328   : > { %948 = vst [vmem:[#allocation2 + $0x18] sm:$0xf] %v946_v39  ;;  %1058 = vmatpush.msrb.mxu2 %v1027_v58  ;;  %v1028_v52 = vld [vmem:[#allocation2 + $0x20] sm:$0xff]  ;;  %vm1818_vm10 = vmmov %vm1817_vm6 }
 0x329   : > { %949 = vst [vmem:[#allocation2 + $0x10] sm:$0xf] %v947_v57  ;;  %1078 = vmatpush.msrb.mxu3 %v1028_v52 }
 0x32a   : > { %1059 = vmatpush.msrb.mxu2 %v1025_v59 }
 0x32b   : > { %1079 = vmatpush.msrb.mxu3 %v1026_v60 }
 0x32c   : > { %v915_v32 = vpop.permute.xlu1 %914 }
 0x32d   : > { %v927_v38 = vpop.permute.xlu0 %926  ;;  %v918_v33 = vsel %vm1815_vm3, %v915_v32, %v917_v61  ;;  %v919_v43 = vsel %vm1816_vm9, %v917_v61, %v915_v32 }
 0x32e   : > { %v928_v62 = vsel %vm1817_vm6, %v925_v51, %v927_v38  ;;  %v929_v53 = vsel %vm1818_vm10, %v927_v38, %v925_v51  ;;  %v920_v63 = vsel %vm1392_vm14, %v919_v43, 0.0  ;;  %v921_v0 = vsel %vm1327_vm4, %v918_v33, 0.0  ;;  %vm1820_vm4 = vmmov %vm1804_vm2 }
 0x32f   : > { %v930_v1 = vsel %vm1819_vm0, %v929_v53, 0.0  ;;  %v935_v2 = vrot.slane %v928_v62, 4  ;;  %922 = vst [vmem:[#allocation2 + $0x30] sm:$0xf] %v920_v63  ;;  %v1023_v30 = vld [vmem:[#allocation2 + $0x18] sm:$0xff]  ;;  %vm1821_vm14 = vmmov %vm1804_vm2 }
 0x330   : > { %v934_v36 = vrot.slane %v930_v1, 4  ;;  %923 = vst [vmem:[#allocation2] sm:$0xf] %v921_v0  ;;  %1060 = vmatpush.msrb.mxu2 %v1023_v30  ;;  %v1024_v3 = vld [vmem:[#allocation2 + $0x10] sm:$0xff] }
 0x331   : > { %939 = vst [vmem:[#allocation2] sm:$0xf0] %v935_v2  ;;  %1080 = vmatpush.msrb.mxu3 %v1024_v3 }
 0x332   : > { %938 = vst [vmem:[#allocation2 + $0x30] sm:$0xf0] %v934_v36 }
 0x334   : > { %v1035_v16 = vpop.permute.xlu1 %1034 }
 0x335   : > { %v628_v26 = vpop.permute.xlu0 %627 }
 0x336   : > { %v657_v8 = vadd.f32 %v656_v6, %v628_v26 }
 0x338   : > { %v1022_v40 = vld [vmem:[#allocation2] sm:$0xff]  ;;  %v684_v10 = vadd.f32 %v1292_v20, %v657_v8 }
 0x339   : > { %1081 = vmatpush.msrb.mxu3 %v1022_v40  ;;  %v1021_v4 = vld [vmem:[#allocation2 + $0x30] sm:$0xff] }
 0x33a   : > { %1061 = vmatpush.msrb.mxu2 %v1021_v4  ;;  %1185 = vmatmul.msk.f32.vlgmr.msrb.gmra.mxu3 %vm1820_vm4, %v1020_v13 }
 0x33b   : > { %1183 = vmatmul.msk.f32.vlgmr.msrb.gmra.mxu2 %vm1821_vm14, %v1020_v13 }
 0x392   : > { %v676_v5 = vpop.f32.mrf.mxu3 }
 0x393   : > { %v677_v7 = vadd.f32 %v676_v5, %v628_v26 }
 0x395   : > { %v685_v9 = vadd.f32 %v1294_v21, %v677_v7 }
 0x397   : > { %v688_v19 = vrot.slane %v685_v9, 4 }
 0x399   : > { %v689_v11 = vsel %vm458_vm1, %v684_v10, %v688_v19 }
 0x39a   : > { %691 = vst [vmem:[%s231_s29] sm:$0xff] %v689_v11 }
 0x3bd   : > { %v1083_v24 = vpop.f32.mrf.mxu3 }
 0x3be   : > { %v1084_v34 = vadd.f32 %v1083_v24, %v1035_v16  ;;  %v1063_v28 = vpop.f32.mrf.mxu2 }
 0x3bf   : > { %v1064_v29 = vadd.f32 %v1063_v28, %v1035_v16 }
 0x3c0   : > { %v1092_v18 = vadd.f32 %v1088_v15, %v1084_v34 }
 0x3c1   : > { %v1091_v21 = vadd.f32 %v1087_v31, %v1064_v29 }
 0x3c2   : > { %v1095_v17 = vrot.slane %v1092_v18, 4 }
 0x3c4   : > { %v1096_v20 = vsel %vm458_vm1, %v1091_v21, %v1095_v17 }
 0x3c5   : > { %1186 = vst [vmem:[%s231_s29 + $0x8] sm:$0xff] %v1096_v20 }
 0x3c6 PF: > { %s15_s18 = sadd.s32 1, %s1216_s18  }
 0x3c7   : > { %p12_p4 = scmp.ge.s32.totalorder %s15_s18, 4  }
 0x3c9   :  { %14 = sbr.rel (!%p12_p4) target bundleno = 1 (0x1), region = 72 }

</bundles_post_ra>
